<compile_context>
chip_gen: v5e
topology: v5e:2x2
jax: 0.10.0
libtpu: 0.0.40
codegen_flags: <defaults>
</compile_context>

<pallas_src>
import math
import numpy as np
import jax
import jax.numpy as jnp
from jax.experimental import pallas as pl
from jax.experimental.pallas import tpu as pltpu

# ---------------- small synthetic config (consistent with the module) ----------------
B = 2            # batch
N_MELS = 8       # input mel channels
T_IN = 16        # input time steps
N_STATE = 32     # model width
N_HEAD = 4
N_LAYER = 2
LAYER_ST = 0
LAYER_ED = 1
N_CTX = 8        # conv2 output length for T_IN=16 (k=3, stride=2, pad=1)
D_HEAD = N_STATE // N_HEAD
D_CAT = N_STATE * (LAYER_ED - LAYER_ST + 1)
LN_EPS = 1e-5
_SQRT2 = math.sqrt(2.0)

# packed small-operand array ("vecs") row layout
ROW_B1C, ROW_B2C, ROW_LNP_W, ROW_LNP_B, ROWS_GLOBAL = 0, 1, 2, 3, 4
ROWS_PER_LAYER = 8        # aln_w, aln_b, bqkv, bo, mln_w, mln_b, b1, b2


# ---------------- in-kernel helpers ----------------
def _gelu(x):
    # matches torch.nn.functional.gelu / nn.GELU() (exact erf form)
    return 0.5 * x * (1.0 + jax.lax.erf(x / _SQRT2))


def _ln(x, w, b):
    mu = jnp.mean(x, axis=-1, keepdims=True)
    var = jnp.mean(jnp.square(x - mu), axis=-1, keepdims=True)
    return (x - mu) * jax.lax.rsqrt(var + LN_EPS) * w + b


def _mm(a, b):
    # A @ B with f32 accumulation on the MXU (operands are bf16)
    return jnp.dot(a, b, preferred_element_type=jnp.float32)


def _mm_nt(a, b):
    # A @ B.T without an explicit transpose (MXU handles the transposed operand)
    return jax.lax.dot_general(a, b, (((1,), (1,)), ((), ())),
                               preferred_element_type=jnp.float32)


# ---------------- the fused per-batch encoder kernel ----------------
def _encoder_kernel(x_ref, w1c_ref, w2c_ref, pe_ref, wqkv_ref, wo_ref,
                    w1_ref, w2_ref, vecs_ref, o_ref, h1_scr):
    f32, bf16 = jnp.float32, jnp.bfloat16
    t_in = x_ref.shape[1]
    t = pe_ref.shape[0]                      # conv2 output length (== n_ctx used)
    d = wo_ref.shape[1]
    d_head = d // N_HEAD
    n_layer = wqkv_ref.shape[0]
    out_lanes = o_ref.shape[-1]

    def vec(row, width):
        # one packed small operand (bias / LN scale) as a (1, width) f32 block
        return vecs_ref[row:row + 1, 0:width]

    x = x_ref[0]                              # (t_in, n_mels) f32

    # ---- conv1 (k=3, s=1, p=1) + GELU: XLU rolls + edge masks, ONE K=3*Cin matmul ----
    ridx = jax.lax.broadcasted_iota(jnp.int32, (t_in, 1), 0)
    x_prev = jnp.where(ridx == 0, 0.0, pltpu.roll(x, shift=1, axis=0))                 # x[t-1]
    x_next = jnp.where(ridx == t_in - 1, 0.0, pltpu.roll(x, shift=t_in - 1, axis=0))   # x[t+1]
    taps1 = jnp.concatenate([x_prev, x, x_next], axis=-1).astype(bf16)                 # (t_in, 3*Cin)
    h1 = _gelu(_mm(taps1, w1c_ref[...]) + vec(ROW_B1C, d))                             # (t_in, D) f32
    h1_scr[...] = h1

    # ---- conv2 (k=3, s=2, p=1) + GELU + pos-emb: strided sublane reads from scratch ----
    even = h1_scr[pl.ds(0, t, stride=2), :]                                            # h1[2t]
    odd = h1_scr[pl.ds(1, t, stride=2), :]                                             # h1[2t+1]
    ridx2 = jax.lax.broadcasted_iota(jnp.int32, (t, 1), 0)
    prev2 = jnp.where(ridx2 == 0, 0.0, pltpu.roll(odd, shift=1, axis=0))               # h1[2t-1]
    taps2 = jnp.concatenate([prev2, even, odd], axis=-1).astype(bf16)                  # (t, 3D)
    h = _gelu(_mm(taps2, w2c_ref[...]) + vec(ROW_B2C, d)) + pe_ref[...]                # (t, D) f32

    outs = []
    for i in range(n_layer):
        base = ROWS_GLOBAL + ROWS_PER_LAYER * i

        # --- self-attention (pre-LN); scale folded into Wq/bq/Wk; fused QKV matmul ---
        xl = _ln(h, vec(base + 0, d), vec(base + 1, d)).astype(bf16)
        qkv = _mm(xl, wqkv_ref[i]) + vec(base + 2, 3 * d)                              # (t, 3D) f32
        q = qkv[:, 0:d].astype(bf16)
        k = qkv[:, d:2 * d].astype(bf16)
        v = qkv[:, 2 * d:3 * d].astype(bf16)
        ctx = []
        for hh in range(N_HEAD):               # static unroll; all dots stay 2-D
            sl = slice(hh * d_head, (hh + 1) * d_head)
            s = _mm_nt(q[:, sl], k[:, sl])                                             # (t, t) f32
            s = s - jnp.max(s, axis=-1, keepdims=True)
            e = jnp.exp(s)
            p = (e * pl.reciprocal(jnp.sum(e, axis=-1, keepdims=True),
                                   approx=True)).astype(bf16)
            ctx.append(_mm(p, v[:, sl]).astype(bf16))                                  # (t, d_head)
        ctx = jnp.concatenate(ctx, axis=-1)    # head concat within one 128-lane group
        h = h + _mm(ctx, wo_ref[i]) + vec(base + 3, d)

        # --- MLP (pre-LN) ---
        xl = _ln(h, vec(base + 4, d), vec(base + 5, d)).astype(bf16)
        mid = _gelu(_mm(xl, w1_ref[i]) + vec(base + 6, 4 * d)).astype(bf16)
        h = h + _mm(mid, w2_ref[i]) + vec(base + 7, d)

        if LAYER_ST <= i <= LAYER_ED:
            outs.append(h)

    xs = jnp.concatenate(outs, axis=-1)                                                # (t, D_CAT)
    d_cat = xs.shape[-1]
    y = _ln(xs, vec(ROW_LNP_W, d_cat), vec(ROW_LNP_B, d_cat))
    pad_w = out_lanes - d_cat
    if pad_w > 0:                              # lane-dense 128-wide store; wrapper slices
        y = jnp.concatenate([y, jnp.zeros((t, pad_w), f32)], axis=-1)
    o_ref[0] = y


# ---------------- host-side builders ----------------
def sinusoids(length, channels, max_timescale=10000):
    assert channels % 2 == 0
    lti = np.log(max_timescale) / (channels // 2 - 1)
    inv = np.exp(-lti * np.arange(channels // 2))
    st = np.arange(length)[:, None] * inv[None, :]
    return jnp.asarray(np.concatenate([np.sin(st), np.cos(st)], axis=1), jnp.float32)


def init_params(key):
    keys = iter(jax.random.split(key, 64))

    def nrm(shape, s=0.05):
        return jax.random.normal(next(keys), shape, jnp.float32) * s

    params = {
        'conv1_w': nrm((N_STATE, N_MELS, 3)), 'conv1_b': nrm((N_STATE,)),
        'conv2_w': nrm((N_STATE, N_STATE, 3)), 'conv2_b': nrm((N_STATE,)),
        'ln_post2_w': jnp.ones((D_CAT,), jnp.float32),
        'ln_post2_b': jnp.zeros((D_CAT,), jnp.float32),
        'blocks': [],
    }
    for _ in range(N_LAYER):
        params['blocks'].append({
            'aln_w': jnp.ones((N_STATE,), jnp.float32),
            'aln_b': jnp.zeros((N_STATE,), jnp.float32),
            'wq': nrm((N_STATE, N_STATE)), 'bq': nrm((N_STATE,)),
            'wk': nrm((N_STATE, N_STATE)),
            'wv': nrm((N_STATE, N_STATE)), 'bv': nrm((N_STATE,)),
            'wo': nrm((N_STATE, N_STATE)), 'bo': nrm((N_STATE,)),
            'mln_w': jnp.ones((N_STATE,), jnp.float32),
            'mln_b': jnp.zeros((N_STATE,), jnp.float32),
            'w1': nrm((4 * N_STATE, N_STATE)), 'b1': nrm((4 * N_STATE,)),
            'w2': nrm((N_STATE, 4 * N_STATE)), 'b2': nrm((N_STATE,)),
        })
    return params


def prepare_params(params, pos_emb, t_in):
    """Repack PyTorch-layout parameters into bf16 MXU-ready operands + one packed
    f32 array of all small biases / LN scales."""
    f32, bf16 = jnp.float32, jnp.bfloat16
    ksz, pad, stride = 3, 1, 2
    n_state = params['conv1_w'].shape[0]
    n_mels = params['conv1_w'].shape[1]
    assert n_state == pos_emb.shape[1], 'incorrect audio shape'
    n_layer = len(params['blocks'])
    d_cat = params['ln_post2_w'].shape[0]
    t_conv = (t_in + 2 * pad - ksz) // stride + 1
    t_seq = min(t_conv, pos_emb.shape[0])      # module truncates the longer side
    scale = (n_state // N_HEAD) ** -0.25

    vw = max(128, 4 * n_state, 3 * n_state, d_cat)
    vecs = np.zeros((ROWS_GLOBAL + ROWS_PER_LAYER * n_layer, vw), np.float32)

    def put(row, v):
        v = np.asarray(v, np.float32).reshape(-1)
        vecs[row, :v.shape[0]] = v

    put(ROW_B1C, params['conv1_b'])
    put(ROW_B2C, params['conv2_b'])
    put(ROW_LNP_W, params['ln_post2_w'])
    put(ROW_LNP_B, params['ln_post2_b'])

    wqkv, wo, w1, w2 = [], [], [], []
    for i, blk in enumerate(params['blocks']):
        base = ROWS_GLOBAL + ROWS_PER_LAYER * i
        put(base + 0, blk['aln_w'])
        put(base + 1, blk['aln_b'])
        put(base + 2, np.concatenate([np.asarray(blk['bq']) * scale,
                                      np.zeros((n_state,), np.float32),
                                      np.asarray(blk['bv'])]))          # key has no bias
        put(base + 3, blk['bo'])
        put(base + 4, blk['mln_w'])
        put(base + 5, blk['mln_b'])
        put(base + 6, blk['b1'])
        put(base + 7, blk['b2'])
        # linear weights pre-transposed to (in, out); d_head**-0.25 folded into Wq/Wk
        wqkv.append(jnp.concatenate([blk['wq'].T * scale,
                                     blk['wk'].T * scale,
                                     blk['wv'].T], axis=-1))
        wo.append(blk['wo'].T)
        w1.append(blk['w1'].T)
        w2.append(blk['w2'].T)

    return {
        # conv taps concatenated along K: (Cout, Cin, K) -> (K*Cin, Cout)
        'w1cat': jnp.transpose(params['conv1_w'], (2, 1, 0)).reshape(ksz * n_mels, n_state).astype(bf16),
        'w2cat': jnp.transpose(params['conv2_w'], (2, 1, 0)).reshape(ksz * n_state, n_state).astype(bf16),
        'pe':    pos_emb[:t_seq].astype(f32),
        'wqkv':  jnp.stack(wqkv).astype(bf16),
        'wo':    jnp.stack(wo).astype(bf16),
        'w1':    jnp.stack(w1).astype(bf16),
        'w2':    jnp.stack(w2).astype(bf16),
        'vecs':  jnp.asarray(vecs),
    }


# ---------------- full forward: one fused pallas_call, grid over batch ----------------
def audio_encoder_forward(x, prep):
    batch, t_in, n_mels = x.shape
    t_seq = prep['pe'].shape[0]
    d = prep['wo'].shape[1]
    d_cat = d * (LAYER_ED - LAYER_ST + 1)
    out_lanes = max(128, ((d_cat + 127) // 128) * 128)   # lane-dense output slab
    nv, vw = prep['vecs'].shape

    out = pl.pallas_call(
        _encoder_kernel,
        out_shape=jax.ShapeDtypeStruct((batch, t_seq, out_lanes), jnp.float32),
        grid=(batch,),
        in_specs=[
            pl.BlockSpec((1, t_in, n_mels), lambda b: (b, 0, 0)),
            pl.BlockSpec(prep['w1cat'].shape, lambda b: (0, 0)),
            pl.BlockSpec(prep['w2cat'].shape, lambda b: (0, 0)),
            pl.BlockSpec(prep['pe'].shape, lambda b: (0, 0)),
            pl.BlockSpec(prep['wqkv'].shape, lambda b: (0, 0, 0)),
            pl.BlockSpec(prep['wo'].shape, lambda b: (0, 0, 0)),
            pl.BlockSpec(prep['w1'].shape, lambda b: (0, 0, 0)),
            pl.BlockSpec(prep['w2'].shape, lambda b: (0, 0, 0)),
            pl.BlockSpec((nv, vw), lambda b: (0, 0)),
        ],
        out_specs=pl.BlockSpec((1, t_seq, out_lanes), lambda b: (b, 0, 0)),
        scratch_shapes=[pltpu.VMEM((t_in, d), jnp.float32)],
        compiler_params=pltpu.CompilerParams(dimension_semantics=("parallel",)),
    )(x.astype(jnp.float32), prep['w1cat'], prep['w2cat'], prep['pe'],
      prep['wqkv'], prep['wo'], prep['w1'], prep['w2'], prep['vecs'])
    return out[:, :, :d_cat]


if __name__ == "__main__":
    key = jax.random.PRNGKey(0)
    k_in, k_par = jax.random.split(key)
    # wrapper input is (batch, time, n_mels) feature-last; the module's
    # x.permute(0, 2, 1) -> Conv1d(NCW) pipeline is reproduced by the kernel.
    x = jax.random.normal(k_in, (B, T_IN, N_MELS), jnp.float32)
    params = init_params(k_par)
    pos_emb = sinusoids(N_CTX, N_STATE)
    prep = prepare_params(params, pos_emb, T_IN)

    fwd = jax.jit(audio_encoder_forward)
    out = jax.block_until_ready(fwd(x, prep))

    assert out.shape == (B, N_CTX, D_CAT), out.shape
    assert bool(jnp.all(jnp.isfinite(out)))
    print("KERNEL_OK")
</pallas_src>

<mosaic_0001>
module attributes {stable_mosaic.version = 11 : i64} {
  func.func @_encoder_kernel(%arg0: i32, %arg1: memref<1x16x8xf32, #tpu.memory_space<vmem>>, %arg2: memref<24x32xbf16, #tpu.memory_space<vmem>>, %arg3: memref<96x32xbf16, #tpu.memory_space<vmem>>, %arg4: memref<8x32xf32, #tpu.memory_space<vmem>>, %arg5: memref<2x32x96xbf16, #tpu.memory_space<vmem>>, %arg6: memref<2x32x32xbf16, #tpu.memory_space<vmem>>, %arg7: memref<2x32x128xbf16, #tpu.memory_space<vmem>>, %arg8: memref<2x128x32xbf16, #tpu.memory_space<vmem>>, %arg9: memref<20x128xf32, #tpu.memory_space<vmem>>, %arg10: memref<1x8x128xf32, #tpu.memory_space<vmem>>, %arg11: memref<16x32xf32, #tpu.memory_space<vmem>>) attributes {dimension_semantics = [#tpu.dimension_semantics<parallel>], iteration_bounds = array<i64: 2>, scalar_prefetch = 0 : i64, scratch_operands = 1 : i64, tpu.core_type = #tpu.core_type<tc>, window_params = [{transform_indices = @transform_0, window_bounds = array<i64: 1, 16, 8>}, {pipeline_mode = #tpu.pipeline_mode<synchronous>, transform_indices = @transform_1, window_bounds = array<i64: 24, 32>}, {pipeline_mode = #tpu.pipeline_mode<synchronous>, transform_indices = @transform_2, window_bounds = array<i64: 96, 32>}, {pipeline_mode = #tpu.pipeline_mode<synchronous>, transform_indices = @transform_3, window_bounds = array<i64: 8, 32>}, {pipeline_mode = #tpu.pipeline_mode<synchronous>, transform_indices = @transform_4, window_bounds = array<i64: 2, 32, 96>}, {pipeline_mode = #tpu.pipeline_mode<synchronous>, transform_indices = @transform_5, window_bounds = array<i64: 2, 32, 32>}, {pipeline_mode = #tpu.pipeline_mode<synchronous>, transform_indices = @transform_6, window_bounds = array<i64: 2, 32, 128>}, {pipeline_mode = #tpu.pipeline_mode<synchronous>, transform_indices = @transform_7, window_bounds = array<i64: 2, 128, 32>}, {pipeline_mode = #tpu.pipeline_mode<synchronous>, transform_indices = @transform_8, window_bounds = array<i64: 20, 128>}, {transform_indices = @transform_9, window_bounds = array<i64: 1, 8, 128>}]} {
    %c0 = arith.constant 0 : index
    %c0_0 = arith.constant 0 : index
    %c0_1 = arith.constant 0 : index
    %0 = vector.load %arg1[%c0, %c0_0, %c0_1] : memref<1x16x8xf32, #tpu.memory_space<vmem>>, vector<1x16x8xf32>
    %1 = vector.shape_cast %0 : vector<1x16x8xf32> to vector<16x8xf32>
    %2 = tpu.iota {dimensions = array<i32: 0>} : vector<16x1xi32>
    %c0_i32 = arith.constant 0 : i32
    %3 = vector.broadcast %c0_i32 : i32 to vector<16x1xi32>
    %4 = arith.cmpi eq, %2, %3 : vector<16x1xi32>
    %c1_i32 = arith.constant 1 : i32
    %5 = tpu.dynamic_rotate %1 by %c1_i32 dim 0 : vector<16x8xf32>, i32 -> vector<16x8xf32>
    %cst = arith.constant 0.000000e+00 : f32
    %6 = vector.shape_cast %4 : vector<16x1xi1> to vector<16x1xi1>
    %7 = vector.broadcast %6 : vector<16x1xi1> to vector<16x8xi1>
    %8 = vector.broadcast %cst : f32 to vector<16x8xf32>
    %9 = arith.select %7, %8, %5 : vector<16x8xi1>, vector<16x8xf32>
    %c15_i32 = arith.constant 15 : i32
    %10 = vector.broadcast %c15_i32 : i32 to vector<16x1xi32>
    %11 = arith.cmpi eq, %2, %10 : vector<16x1xi32>
    %c15_i32_2 = arith.constant 15 : i32
    %12 = tpu.dynamic_rotate %1 by %c15_i32_2 dim 0 : vector<16x8xf32>, i32 -> vector<16x8xf32>
    %cst_3 = arith.constant 0.000000e+00 : f32
    %13 = vector.shape_cast %11 : vector<16x1xi1> to vector<16x1xi1>
    %14 = vector.broadcast %13 : vector<16x1xi1> to vector<16x8xi1>
    %15 = vector.broadcast %cst_3 : f32 to vector<16x8xf32>
    %16 = arith.select %14, %15, %12 : vector<16x8xi1>, vector<16x8xf32>
    %17 = tpu.concatenate %9, %1, %16 in 1 : vector<16x8xf32>, vector<16x8xf32>, vector<16x8xf32> -> vector<16x24xf32>
    %18 = arith.truncf %17 : vector<16x24xf32> to vector<16x24xbf16>
    %c0_4 = arith.constant 0 : index
    %c0_5 = arith.constant 0 : index
    %19 = vector.load %arg2[%c0_4, %c0_5] : memref<24x32xbf16, #tpu.memory_space<vmem>>, vector<24x32xbf16>
    %cst_6 = arith.constant dense<0.000000e+00> : vector<16x32xf32>
    %20 = tpu.matmul %18, %19, %cst_6 {dimension_numbers = #tpu.dot_dimension_numbers<[1], [0], [0], [1], [0, 0, 1, 1], [], []>} : vector<16x24xbf16>, vector<24x32xbf16>, vector<16x32xf32> -> vector<16x32xf32>
    %c0_7 = arith.constant 0 : index
    %c0_8 = arith.constant 0 : index
    %21 = vector.load %arg9[%c0_7, %c0_8] : memref<20x128xf32, #tpu.memory_space<vmem>>, vector<1x32xf32>
    %22 = vector.broadcast %21 : vector<1x32xf32> to vector<16x32xf32>
    %23 = arith.addf %20, %22 : vector<16x32xf32>
    %cst_9 = arith.constant 5.000000e-01 : f32
    %24 = vector.broadcast %cst_9 : f32 to vector<16x32xf32>
    %25 = arith.mulf %24, %23 : vector<16x32xf32>
    %cst_10 = arith.constant 1.41421354 : f32
    %26 = vector.broadcast %cst_10 : f32 to vector<16x32xf32>
    %27 = arith.divf %23, %26 : vector<16x32xf32>
    %28 = math.erf %27 : vector<16x32xf32>
    %cst_11 = arith.constant 1.000000e+00 : f32
    %29 = vector.broadcast %cst_11 : f32 to vector<16x32xf32>
    %30 = arith.addf %29, %28 : vector<16x32xf32>
    %31 = arith.mulf %25, %30 : vector<16x32xf32>
    %c0_12 = arith.constant 0 : index
    %c0_13 = arith.constant 0 : index
    %32 = vector.load %arg11[%c0_12, %c0_13] : memref<16x32xf32, #tpu.memory_space<vmem>>, vector<16x32xf32>
    tpu.vector_store %arg11[%c0_12, %c0_13], %31 {strides = array<i32>} : memref<16x32xf32, #tpu.memory_space<vmem>>, vector<16x32xf32>,
    %c0_14 = arith.constant 0 : index
    %c0_15 = arith.constant 0 : index
    %33 = tpu.strided_load %arg11[%c0_14, %c0_15] {strides = array<i32: 2, 1>} : memref<16x32xf32, #tpu.memory_space<vmem>>, vector<8x32xf32>
    %c1 = arith.constant 1 : index
    %c0_16 = arith.constant 0 : index
    %34 = tpu.strided_load %arg11[%c1, %c0_16] {strides = array<i32: 2, 1>} : memref<16x32xf32, #tpu.memory_space<vmem>>, vector<8x32xf32>
    %35 = tpu.iota {dimensions = array<i32: 0>} : vector<8x1xi32>
    %c0_i32_17 = arith.constant 0 : i32
    %36 = vector.broadcast %c0_i32_17 : i32 to vector<8x1xi32>
    %37 = arith.cmpi eq, %35, %36 : vector<8x1xi32>
    %c1_i32_18 = arith.constant 1 : i32
    %38 = tpu.dynamic_rotate %34 by %c1_i32_18 dim 0 : vector<8x32xf32>, i32 -> vector<8x32xf32>
    %cst_19 = arith.constant 0.000000e+00 : f32
    %39 = vector.shape_cast %37 : vector<8x1xi1> to vector<8x1xi1>
    %40 = vector.broadcast %39 : vector<8x1xi1> to vector<8x32xi1>
    %41 = vector.broadcast %cst_19 : f32 to vector<8x32xf32>
    %42 = arith.select %40, %41, %38 : vector<8x32xi1>, vector<8x32xf32>
    %43 = tpu.concatenate %42, %33, %34 in 1 : vector<8x32xf32>, vector<8x32xf32>, vector<8x32xf32> -> vector<8x96xf32>
    %44 = arith.truncf %43 : vector<8x96xf32> to vector<8x96xbf16>
    %c0_20 = arith.constant 0 : index
    %c0_21 = arith.constant 0 : index
    %45 = vector.load %arg3[%c0_20, %c0_21] : memref<96x32xbf16, #tpu.memory_space<vmem>>, vector<96x32xbf16>
    %cst_22 = arith.constant dense<0.000000e+00> : vector<8x32xf32>
    %46 = tpu.matmul %44, %45, %cst_22 {dimension_numbers = #tpu.dot_dimension_numbers<[1], [0], [0], [1], [0, 0, 1, 1], [], []>} : vector<8x96xbf16>, vector<96x32xbf16>, vector<8x32xf32> -> vector<8x32xf32>
    %c1_23 = arith.constant 1 : index
    %c0_24 = arith.constant 0 : index
    %47 = vector.load %arg9[%c1_23, %c0_24] : memref<20x128xf32, #tpu.memory_space<vmem>>, vector<1x32xf32>
    %48 = vector.broadcast %47 : vector<1x32xf32> to vector<8x32xf32>
    %49 = arith.addf %46, %48 : vector<8x32xf32>
    %cst_25 = arith.constant 5.000000e-01 : f32
    %50 = vector.broadcast %cst_25 : f32 to vector<8x32xf32>
    %51 = arith.mulf %50, %49 : vector<8x32xf32>
    %cst_26 = arith.constant 1.41421354 : f32
    %52 = vector.broadcast %cst_26 : f32 to vector<8x32xf32>
    %53 = arith.divf %49, %52 : vector<8x32xf32>
    %54 = math.erf %53 : vector<8x32xf32>
    %cst_27 = arith.constant 1.000000e+00 : f32
    %55 = vector.broadcast %cst_27 : f32 to vector<8x32xf32>
    %56 = arith.addf %55, %54 : vector<8x32xf32>
    %57 = arith.mulf %51, %56 : vector<8x32xf32>
    %c0_28 = arith.constant 0 : index
    %c0_29 = arith.constant 0 : index
    %58 = vector.load %arg4[%c0_28, %c0_29] : memref<8x32xf32, #tpu.memory_space<vmem>>, vector<8x32xf32>
    %59 = arith.addf %57, %58 : vector<8x32xf32>
    %c4 = arith.constant 4 : index
    %c0_30 = arith.constant 0 : index
    %60 = vector.load %arg9[%c4, %c0_30] : memref<20x128xf32, #tpu.memory_space<vmem>>, vector<1x32xf32>
    %c5 = arith.constant 5 : index
    %c0_31 = arith.constant 0 : index
    %61 = vector.load %arg9[%c5, %c0_31] : memref<20x128xf32, #tpu.memory_space<vmem>>, vector<1x32xf32>
    %cst_32 = arith.constant dense<0.000000e+00> : vector<8xf32>
    %62 = vector.multi_reduction <add>, %59, %cst_32 [1] : vector<8x32xf32> to vector<8xf32>
    %63 = vector.shape_cast %62 : vector<8xf32> to vector<8x1xf32>
    %cst_33 = arith.constant 3.200000e+01 : f32
    %64 = vector.broadcast %cst_33 : f32 to vector<8x1xf32>
    %65 = arith.divf %63, %64 : vector<8x1xf32>
    %66 = vector.broadcast %65 : vector<8x1xf32> to vector<8x32xf32>
    %67 = arith.subf %59, %66 : vector<8x32xf32>
    %68 = arith.mulf %67, %67 : vector<8x32xf32>
    %cst_34 = arith.constant dense<0.000000e+00> : vector<8xf32>
    %69 = vector.multi_reduction <add>, %68, %cst_34 [1] : vector<8x32xf32> to vector<8xf32>
    %70 = vector.shape_cast %69 : vector<8xf32> to vector<8x1xf32>
    %cst_35 = arith.constant 3.200000e+01 : f32
    %71 = vector.broadcast %cst_35 : f32 to vector<8x1xf32>
    %72 = arith.divf %70, %71 : vector<8x1xf32>
    %73 = vector.broadcast %65 : vector<8x1xf32> to vector<8x32xf32>
    %74 = arith.subf %59, %73 : vector<8x32xf32>
    %cst_36 = arith.constant 9.99999974E-6 : f32
    %75 = vector.broadcast %cst_36 : f32 to vector<8x1xf32>
    %76 = arith.addf %72, %75 : vector<8x1xf32>
    %77 = math.rsqrt %76 : vector<8x1xf32>
    %78 = vector.broadcast %77 : vector<8x1xf32> to vector<8x32xf32>
    %79 = arith.mulf %74, %78 : vector<8x32xf32>
    %80 = vector.broadcast %60 : vector<1x32xf32> to vector<8x32xf32>
    %81 = arith.mulf %79, %80 : vector<8x32xf32>
    %82 = vector.broadcast %61 : vector<1x32xf32> to vector<8x32xf32>
    %83 = arith.addf %81, %82 : vector<8x32xf32>
    %84 = arith.truncf %83 : vector<8x32xf32> to vector<8x32xbf16>
    %c0_37 = arith.constant 0 : index
    %c0_38 = arith.constant 0 : index
    %c0_39 = arith.constant 0 : index
    %85 = vector.load %arg5[%c0_37, %c0_38, %c0_39] : memref<2x32x96xbf16, #tpu.memory_space<vmem>>, vector<1x32x96xbf16>
    %86 = vector.shape_cast %85 : vector<1x32x96xbf16> to vector<32x96xbf16>
    %cst_40 = arith.constant dense<0.000000e+00> : vector<8x96xf32>
    %87 = tpu.matmul %84, %86, %cst_40 {dimension_numbers = #tpu.dot_dimension_numbers<[1], [0], [0], [1], [0, 0, 1, 1], [], []>} : vector<8x32xbf16>, vector<32x96xbf16>, vector<8x96xf32> -> vector<8x96xf32>
    %c6 = arith.constant 6 : index
    %c0_41 = arith.constant 0 : index
    %88 = vector.load %arg9[%c6, %c0_41] : memref<20x128xf32, #tpu.memory_space<vmem>>, vector<1x96xf32>
    %89 = vector.broadcast %88 : vector<1x96xf32> to vector<8x96xf32>
    %90 = arith.addf %87, %89 : vector<8x96xf32>
    %91 = vector.extract_strided_slice %90 {offsets = [0, 0], sizes = [8, 32], strides = [1, 1]} : vector<8x96xf32> to vector<8x32xf32>
    %92 = arith.truncf %91 : vector<8x32xf32> to vector<8x32xbf16>
    %93 = vector.extract_strided_slice %90 {offsets = [0, 32], sizes = [8, 32], strides = [1, 1]} : vector<8x96xf32> to vector<8x32xf32>
    %94 = arith.truncf %93 : vector<8x32xf32> to vector<8x32xbf16>
    %95 = vector.extract_strided_slice %90 {offsets = [0, 64], sizes = [8, 32], strides = [1, 1]} : vector<8x96xf32> to vector<8x32xf32>
    %96 = arith.truncf %95 : vector<8x32xf32> to vector<8x32xbf16>
    %97 = vector.extract_strided_slice %92 {offsets = [0, 0], sizes = [8, 8], strides = [1, 1]} : vector<8x32xbf16> to vector<8x8xbf16>
    %98 = vector.extract_strided_slice %94 {offsets = [0, 0], sizes = [8, 8], strides = [1, 1]} : vector<8x32xbf16> to vector<8x8xbf16>
    %cst_42 = arith.constant dense<0.000000e+00> : vector<8x8xf32>
    %99 = tpu.matmul %97, %98, %cst_42 {dimension_numbers = #tpu.dot_dimension_numbers<[1], [1], [0], [0], [0, 0, 1, 0], [], []>} : vector<8x8xbf16>, vector<8x8xbf16>, vector<8x8xf32> -> vector<8x8xf32>
    %cst_43 = arith.constant dense<0xFF800000> : vector<8xf32>
    %100 = vector.multi_reduction <maximumf>, %99, %cst_43 [1] : vector<8x8xf32> to vector<8xf32>
    %101 = vector.shape_cast %100 : vector<8xf32> to vector<8x1xf32>
    %102 = vector.broadcast %101 : vector<8x1xf32> to vector<8x8xf32>
    %103 = arith.subf %99, %102 : vector<8x8xf32>
    %104 = math.exp %103 : vector<8x8xf32>
    %cst_44 = arith.constant dense<0.000000e+00> : vector<8xf32>
    %105 = vector.multi_reduction <add>, %104, %cst_44 [1] : vector<8x8xf32> to vector<8xf32>
    %106 = vector.shape_cast %105 : vector<8xf32> to vector<8x1xf32>
    %107 = tpu.reciprocal %106 {approx = true} : vector<8x1xf32> -> vector<8x1xf32>
    %108 = vector.broadcast %107 : vector<8x1xf32> to vector<8x8xf32>
    %109 = arith.mulf %104, %108 : vector<8x8xf32>
    %110 = arith.truncf %109 : vector<8x8xf32> to vector<8x8xbf16>
    %111 = vector.extract_strided_slice %96 {offsets = [0, 0], sizes = [8, 8], strides = [1, 1]} : vector<8x32xbf16> to vector<8x8xbf16>
    %cst_45 = arith.constant dense<0.000000e+00> : vector<8x8xf32>
    %112 = tpu.matmul %110, %111, %cst_45 {dimension_numbers = #tpu.dot_dimension_numbers<[1], [0], [0], [1], [0, 0, 1, 1], [], []>} : vector<8x8xbf16>, vector<8x8xbf16>, vector<8x8xf32> -> vector<8x8xf32>
    %113 = arith.truncf %112 : vector<8x8xf32> to vector<8x8xbf16>
    %114 = vector.extract_strided_slice %92 {offsets = [0, 8], sizes = [8, 8], strides = [1, 1]} : vector<8x32xbf16> to vector<8x8xbf16>
    %115 = vector.extract_strided_slice %94 {offsets = [0, 8], sizes = [8, 8], strides = [1, 1]} : vector<8x32xbf16> to vector<8x8xbf16>
    %cst_46 = arith.constant dense<0.000000e+00> : vector<8x8xf32>
    %116 = tpu.matmul %114, %115, %cst_46 {dimension_numbers = #tpu.dot_dimension_numbers<[1], [1], [0], [0], [0, 0, 1, 0], [], []>} : vector<8x8xbf16>, vector<8x8xbf16>, vector<8x8xf32> -> vector<8x8xf32>
    %cst_47 = arith.constant dense<0xFF800000> : vector<8xf32>
    %117 = vector.multi_reduction <maximumf>, %116, %cst_47 [1] : vector<8x8xf32> to vector<8xf32>
    %118 = vector.shape_cast %117 : vector<8xf32> to vector<8x1xf32>
    %119 = vector.broadcast %118 : vector<8x1xf32> to vector<8x8xf32>
    %120 = arith.subf %116, %119 : vector<8x8xf32>
    %121 = math.exp %120 : vector<8x8xf32>
    %cst_48 = arith.constant dense<0.000000e+00> : vector<8xf32>
    %122 = vector.multi_reduction <add>, %121, %cst_48 [1] : vector<8x8xf32> to vector<8xf32>
    %123 = vector.shape_cast %122 : vector<8xf32> to vector<8x1xf32>
    %124 = tpu.reciprocal %123 {approx = true} : vector<8x1xf32> -> vector<8x1xf32>
    %125 = vector.broadcast %124 : vector<8x1xf32> to vector<8x8xf32>
    %126 = arith.mulf %121, %125 : vector<8x8xf32>
    %127 = arith.truncf %126 : vector<8x8xf32> to vector<8x8xbf16>
    %128 = vector.extract_strided_slice %96 {offsets = [0, 8], sizes = [8, 8], strides = [1, 1]} : vector<8x32xbf16> to vector<8x8xbf16>
    %cst_49 = arith.constant dense<0.000000e+00> : vector<8x8xf32>
    %129 = tpu.matmul %127, %128, %cst_49 {dimension_numbers = #tpu.dot_dimension_numbers<[1], [0], [0], [1], [0, 0, 1, 1], [], []>} : vector<8x8xbf16>, vector<8x8xbf16>, vector<8x8xf32> -> vector<8x8xf32>
    %130 = arith.truncf %129 : vector<8x8xf32> to vector<8x8xbf16>
    %131 = vector.extract_strided_slice %92 {offsets = [0, 16], sizes = [8, 8], strides = [1, 1]} : vector<8x32xbf16> to vector<8x8xbf16>
    %132 = vector.extract_strided_slice %94 {offsets = [0, 16], sizes = [8, 8], strides = [1, 1]} : vector<8x32xbf16> to vector<8x8xbf16>
    %cst_50 = arith.constant dense<0.000000e+00> : vector<8x8xf32>
    %133 = tpu.matmul %131, %132, %cst_50 {dimension_numbers = #tpu.dot_dimension_numbers<[1], [1], [0], [0], [0, 0, 1, 0], [], []>} : vector<8x8xbf16>, vector<8x8xbf16>, vector<8x8xf32> -> vector<8x8xf32>
    %cst_51 = arith.constant dense<0xFF800000> : vector<8xf32>
    %134 = vector.multi_reduction <maximumf>, %133, %cst_51 [1] : vector<8x8xf32> to vector<8xf32>
    %135 = vector.shape_cast %134 : vector<8xf32> to vector<8x1xf32>
    %136 = vector.broadcast %135 : vector<8x1xf32> to vector<8x8xf32>
    %137 = arith.subf %133, %136 : vector<8x8xf32>
    %138 = math.exp %137 : vector<8x8xf32>
    %cst_52 = arith.constant dense<0.000000e+00> : vector<8xf32>
    %139 = vector.multi_reduction <add>, %138, %cst_52 [1] : vector<8x8xf32> to vector<8xf32>
    %140 = vector.shape_cast %139 : vector<8xf32> to vector<8x1xf32>
    %141 = tpu.reciprocal %140 {approx = true} : vector<8x1xf32> -> vector<8x1xf32>
    %142 = vector.broadcast %141 : vector<8x1xf32> to vector<8x8xf32>
    %143 = arith.mulf %138, %142 : vector<8x8xf32>
    %144 = arith.truncf %143 : vector<8x8xf32> to vector<8x8xbf16>
    %145 = vector.extract_strided_slice %96 {offsets = [0, 16], sizes = [8, 8], strides = [1, 1]} : vector<8x32xbf16> to vector<8x8xbf16>
    %cst_53 = arith.constant dense<0.000000e+00> : vector<8x8xf32>
    %146 = tpu.matmul %144, %145, %cst_53 {dimension_numbers = #tpu.dot_dimension_numbers<[1], [0], [0], [1], [0, 0, 1, 1], [], []>} : vector<8x8xbf16>, vector<8x8xbf16>, vector<8x8xf32> -> vector<8x8xf32>
    %147 = arith.truncf %146 : vector<8x8xf32> to vector<8x8xbf16>
    %148 = vector.extract_strided_slice %92 {offsets = [0, 24], sizes = [8, 8], strides = [1, 1]} : vector<8x32xbf16> to vector<8x8xbf16>
    %149 = vector.extract_strided_slice %94 {offsets = [0, 24], sizes = [8, 8], strides = [1, 1]} : vector<8x32xbf16> to vector<8x8xbf16>
    %cst_54 = arith.constant dense<0.000000e+00> : vector<8x8xf32>
    %150 = tpu.matmul %148, %149, %cst_54 {dimension_numbers = #tpu.dot_dimension_numbers<[1], [1], [0], [0], [0, 0, 1, 0], [], []>} : vector<8x8xbf16>, vector<8x8xbf16>, vector<8x8xf32> -> vector<8x8xf32>
    %cst_55 = arith.constant dense<0xFF800000> : vector<8xf32>
    %151 = vector.multi_reduction <maximumf>, %150, %cst_55 [1] : vector<8x8xf32> to vector<8xf32>
    %152 = vector.shape_cast %151 : vector<8xf32> to vector<8x1xf32>
    %153 = vector.broadcast %152 : vector<8x1xf32> to vector<8x8xf32>
    %154 = arith.subf %150, %153 : vector<8x8xf32>
    %155 = math.exp %154 : vector<8x8xf32>
    %cst_56 = arith.constant dense<0.000000e+00> : vector<8xf32>
    %156 = vector.multi_reduction <add>, %155, %cst_56 [1] : vector<8x8xf32> to vector<8xf32>
    %157 = vector.shape_cast %156 : vector<8xf32> to vector<8x1xf32>
    %158 = tpu.reciprocal %157 {approx = true} : vector<8x1xf32> -> vector<8x1xf32>
    %159 = vector.broadcast %158 : vector<8x1xf32> to vector<8x8xf32>
    %160 = arith.mulf %155, %159 : vector<8x8xf32>
    %161 = arith.truncf %160 : vector<8x8xf32> to vector<8x8xbf16>
    %162 = vector.extract_strided_slice %96 {offsets = [0, 24], sizes = [8, 8], strides = [1, 1]} : vector<8x32xbf16> to vector<8x8xbf16>
    %cst_57 = arith.constant dense<0.000000e+00> : vector<8x8xf32>
    %163 = tpu.matmul %161, %162, %cst_57 {dimension_numbers = #tpu.dot_dimension_numbers<[1], [0], [0], [1], [0, 0, 1, 1], [], []>} : vector<8x8xbf16>, vector<8x8xbf16>, vector<8x8xf32> -> vector<8x8xf32>
    %164 = arith.truncf %163 : vector<8x8xf32> to vector<8x8xbf16>
    %165 = tpu.concatenate %113, %130, %147, %164 in 1 : vector<8x8xbf16>, vector<8x8xbf16>, vector<8x8xbf16>, vector<8x8xbf16> -> vector<8x32xbf16>
    %c0_58 = arith.constant 0 : index
    %c0_59 = arith.constant 0 : index
    %c0_60 = arith.constant 0 : index
    %166 = vector.load %arg6[%c0_58, %c0_59, %c0_60] : memref<2x32x32xbf16, #tpu.memory_space<vmem>>, vector<1x32x32xbf16>
    %167 = vector.shape_cast %166 : vector<1x32x32xbf16> to vector<32x32xbf16>
    %cst_61 = arith.constant dense<0.000000e+00> : vector<8x32xf32>
    %168 = tpu.matmul %165, %167, %cst_61 {dimension_numbers = #tpu.dot_dimension_numbers<[1], [0], [0], [1], [0, 0, 1, 1], [], []>} : vector<8x32xbf16>, vector<32x32xbf16>, vector<8x32xf32> -> vector<8x32xf32>
    %169 = arith.addf %59, %168 : vector<8x32xf32>
    %c7 = arith.constant 7 : index
    %c0_62 = arith.constant 0 : index
    %170 = vector.load %arg9[%c7, %c0_62] : memref<20x128xf32, #tpu.memory_space<vmem>>, vector<1x32xf32>
    %171 = vector.broadcast %170 : vector<1x32xf32> to vector<8x32xf32>
    %172 = arith.addf %169, %171 : vector<8x32xf32>
    %c8 = arith.constant 8 : index
    %c0_63 = arith.constant 0 : index
    %173 = vector.load %arg9[%c8, %c0_63] : memref<20x128xf32, #tpu.memory_space<vmem>>, vector<1x32xf32>
    %c9 = arith.constant 9 : index
    %c0_64 = arith.constant 0 : index
    %174 = vector.load %arg9[%c9, %c0_64] : memref<20x128xf32, #tpu.memory_space<vmem>>, vector<1x32xf32>
    %cst_65 = arith.constant dense<0.000000e+00> : vector<8xf32>
    %175 = vector.multi_reduction <add>, %172, %cst_65 [1] : vector<8x32xf32> to vector<8xf32>
    %176 = vector.shape_cast %175 : vector<8xf32> to vector<8x1xf32>
    %cst_66 = arith.constant 3.200000e+01 : f32
    %177 = vector.broadcast %cst_66 : f32 to vector<8x1xf32>
    %178 = arith.divf %176, %177 : vector<8x1xf32>
    %179 = vector.broadcast %178 : vector<8x1xf32> to vector<8x32xf32>
    %180 = arith.subf %172, %179 : vector<8x32xf32>
    %181 = arith.mulf %180, %180 : vector<8x32xf32>
    %cst_67 = arith.constant dense<0.000000e+00> : vector<8xf32>
    %182 = vector.multi_reduction <add>, %181, %cst_67 [1] : vector<8x32xf32> to vector<8xf32>
    %183 = vector.shape_cast %182 : vector<8xf32> to vector<8x1xf32>
    %cst_68 = arith.constant 3.200000e+01 : f32
    %184 = vector.broadcast %cst_68 : f32 to vector<8x1xf32>
    %185 = arith.divf %183, %184 : vector<8x1xf32>
    %186 = vector.broadcast %178 : vector<8x1xf32> to vector<8x32xf32>
    %187 = arith.subf %172, %186 : vector<8x32xf32>
    %cst_69 = arith.constant 9.99999974E-6 : f32
    %188 = vector.broadcast %cst_69 : f32 to vector<8x1xf32>
    %189 = arith.addf %185, %188 : vector<8x1xf32>
    %190 = math.rsqrt %189 : vector<8x1xf32>
    %191 = vector.broadcast %190 : vector<8x1xf32> to vector<8x32xf32>
    %192 = arith.mulf %187, %191 : vector<8x32xf32>
    %193 = vector.broadcast %173 : vector<1x32xf32> to vector<8x32xf32>
    %194 = arith.mulf %192, %193 : vector<8x32xf32>
    %195 = vector.broadcast %174 : vector<1x32xf32> to vector<8x32xf32>
    %196 = arith.addf %194, %195 : vector<8x32xf32>
    %197 = arith.truncf %196 : vector<8x32xf32> to vector<8x32xbf16>
    %c0_70 = arith.constant 0 : index
    %c0_71 = arith.constant 0 : index
    %c0_72 = arith.constant 0 : index
    %198 = vector.load %arg7[%c0_70, %c0_71, %c0_72] : memref<2x32x128xbf16, #tpu.memory_space<vmem>>, vector<1x32x128xbf16>
    %199 = vector.shape_cast %198 : vector<1x32x128xbf16> to vector<32x128xbf16>
    %cst_73 = arith.constant dense<0.000000e+00> : vector<8x128xf32>
    %200 = tpu.matmul %197, %199, %cst_73 {dimension_numbers = #tpu.dot_dimension_numbers<[1], [0], [0], [1], [0, 0, 1, 1], [], []>} : vector<8x32xbf16>, vector<32x128xbf16>, vector<8x128xf32> -> vector<8x128xf32>
    %c10 = arith.constant 10 : index
    %c0_74 = arith.constant 0 : index
    %201 = vector.load %arg9[%c10, %c0_74] : memref<20x128xf32, #tpu.memory_space<vmem>>, vector<1x128xf32>
    %202 = vector.broadcast %201 : vector<1x128xf32> to vector<8x128xf32>
    %203 = arith.addf %200, %202 : vector<8x128xf32>
    %cst_75 = arith.constant 5.000000e-01 : f32
    %204 = vector.broadcast %cst_75 : f32 to vector<8x128xf32>
    %205 = arith.mulf %204, %203 : vector<8x128xf32>
    %cst_76 = arith.constant 1.41421354 : f32
    %206 = vector.broadcast %cst_76 : f32 to vector<8x128xf32>
    %207 = arith.divf %203, %206 : vector<8x128xf32>
    %208 = math.erf %207 : vector<8x128xf32>
    %cst_77 = arith.constant 1.000000e+00 : f32
    %209 = vector.broadcast %cst_77 : f32 to vector<8x128xf32>
    %210 = arith.addf %209, %208 : vector<8x128xf32>
    %211 = arith.mulf %205, %210 : vector<8x128xf32>
    %212 = arith.truncf %211 : vector<8x128xf32> to vector<8x128xbf16>
    %c0_78 = arith.constant 0 : index
    %c0_79 = arith.constant 0 : index
    %c0_80 = arith.constant 0 : index
    %213 = vector.load %arg8[%c0_78, %c0_79, %c0_80] : memref<2x128x32xbf16, #tpu.memory_space<vmem>>, vector<1x128x32xbf16>
    %214 = vector.shape_cast %213 : vector<1x128x32xbf16> to vector<128x32xbf16>
    %cst_81 = arith.constant dense<0.000000e+00> : vector<8x32xf32>
    %215 = tpu.matmul %212, %214, %cst_81 {dimension_numbers = #tpu.dot_dimension_numbers<[1], [0], [0], [1], [0, 0, 1, 1], [], []>} : vector<8x128xbf16>, vector<128x32xbf16>, vector<8x32xf32> -> vector<8x32xf32>
    %216 = arith.addf %172, %215 : vector<8x32xf32>
    %c11 = arith.constant 11 : index
    %c0_82 = arith.constant 0 : index
    %217 = vector.load %arg9[%c11, %c0_82] : memref<20x128xf32, #tpu.memory_space<vmem>>, vector<1x32xf32>
    %218 = vector.broadcast %217 : vector<1x32xf32> to vector<8x32xf32>
    %219 = arith.addf %216, %218 : vector<8x32xf32>
    %c12 = arith.constant 12 : index
    %c0_83 = arith.constant 0 : index
    %220 = vector.load %arg9[%c12, %c0_83] : memref<20x128xf32, #tpu.memory_space<vmem>>, vector<1x32xf32>
    %c13 = arith.constant 13 : index
    %c0_84 = arith.constant 0 : index
    %221 = vector.load %arg9[%c13, %c0_84] : memref<20x128xf32, #tpu.memory_space<vmem>>, vector<1x32xf32>
    %cst_85 = arith.constant dense<0.000000e+00> : vector<8xf32>
    %222 = vector.multi_reduction <add>, %219, %cst_85 [1] : vector<8x32xf32> to vector<8xf32>
    %223 = vector.shape_cast %222 : vector<8xf32> to vector<8x1xf32>
    %cst_86 = arith.constant 3.200000e+01 : f32
    %224 = vector.broadcast %cst_86 : f32 to vector<8x1xf32>
    %225 = arith.divf %223, %224 : vector<8x1xf32>
    %226 = vector.broadcast %225 : vector<8x1xf32> to vector<8x32xf32>
    %227 = arith.subf %219, %226 : vector<8x32xf32>
    %228 = arith.mulf %227, %227 : vector<8x32xf32>
    %cst_87 = arith.constant dense<0.000000e+00> : vector<8xf32>
    %229 = vector.multi_reduction <add>, %228, %cst_87 [1] : vector<8x32xf32> to vector<8xf32>
    %230 = vector.shape_cast %229 : vector<8xf32> to vector<8x1xf32>
    %cst_88 = arith.constant 3.200000e+01 : f32
    %231 = vector.broadcast %cst_88 : f32 to vector<8x1xf32>
    %232 = arith.divf %230, %231 : vector<8x1xf32>
    %233 = vector.broadcast %225 : vector<8x1xf32> to vector<8x32xf32>
    %234 = arith.subf %219, %233 : vector<8x32xf32>
    %cst_89 = arith.constant 9.99999974E-6 : f32
    %235 = vector.broadcast %cst_89 : f32 to vector<8x1xf32>
    %236 = arith.addf %232, %235 : vector<8x1xf32>
    %237 = math.rsqrt %236 : vector<8x1xf32>
    %238 = vector.broadcast %237 : vector<8x1xf32> to vector<8x32xf32>
    %239 = arith.mulf %234, %238 : vector<8x32xf32>
    %240 = vector.broadcast %220 : vector<1x32xf32> to vector<8x32xf32>
    %241 = arith.mulf %239, %240 : vector<8x32xf32>
    %242 = vector.broadcast %221 : vector<1x32xf32> to vector<8x32xf32>
    %243 = arith.addf %241, %242 : vector<8x32xf32>
    %244 = arith.truncf %243 : vector<8x32xf32> to vector<8x32xbf16>
    %c1_90 = arith.constant 1 : index
    %c0_91 = arith.constant 0 : index
    %c0_92 = arith.constant 0 : index
    %245 = vector.load %arg5[%c1_90, %c0_91, %c0_92] : memref<2x32x96xbf16, #tpu.memory_space<vmem>>, vector<1x32x96xbf16>
    %246 = vector.shape_cast %245 : vector<1x32x96xbf16> to vector<32x96xbf16>
    %cst_93 = arith.constant dense<0.000000e+00> : vector<8x96xf32>
    %247 = tpu.matmul %244, %246, %cst_93 {dimension_numbers = #tpu.dot_dimension_numbers<[1], [0], [0], [1], [0, 0, 1, 1], [], []>} : vector<8x32xbf16>, vector<32x96xbf16>, vector<8x96xf32> -> vector<8x96xf32>
    %c14 = arith.constant 14 : index
    %c0_94 = arith.constant 0 : index
    %248 = vector.load %arg9[%c14, %c0_94] : memref<20x128xf32, #tpu.memory_space<vmem>>, vector<1x96xf32>
    %249 = vector.broadcast %248 : vector<1x96xf32> to vector<8x96xf32>
    %250 = arith.addf %247, %249 : vector<8x96xf32>
    %251 = vector.extract_strided_slice %250 {offsets = [0, 0], sizes = [8, 32], strides = [1, 1]} : vector<8x96xf32> to vector<8x32xf32>
    %252 = arith.truncf %251 : vector<8x32xf32> to vector<8x32xbf16>
    %253 = vector.extract_strided_slice %250 {offsets = [0, 32], sizes = [8, 32], strides = [1, 1]} : vector<8x96xf32> to vector<8x32xf32>
    %254 = arith.truncf %253 : vector<8x32xf32> to vector<8x32xbf16>
    %255 = vector.extract_strided_slice %250 {offsets = [0, 64], sizes = [8, 32], strides = [1, 1]} : vector<8x96xf32> to vector<8x32xf32>
    %256 = arith.truncf %255 : vector<8x32xf32> to vector<8x32xbf16>
    %257 = vector.extract_strided_slice %252 {offsets = [0, 0], sizes = [8, 8], strides = [1, 1]} : vector<8x32xbf16> to vector<8x8xbf16>
    %258 = vector.extract_strided_slice %254 {offsets = [0, 0], sizes = [8, 8], strides = [1, 1]} : vector<8x32xbf16> to vector<8x8xbf16>
    %cst_95 = arith.constant dense<0.000000e+00> : vector<8x8xf32>
    %259 = tpu.matmul %257, %258, %cst_95 {dimension_numbers = #tpu.dot_dimension_numbers<[1], [1], [0], [0], [0, 0, 1, 0], [], []>} : vector<8x8xbf16>, vector<8x8xbf16>, vector<8x8xf32> -> vector<8x8xf32>
    %cst_96 = arith.constant dense<0xFF800000> : vector<8xf32>
    %260 = vector.multi_reduction <maximumf>, %259, %cst_96 [1] : vector<8x8xf32> to vector<8xf32>
    %261 = vector.shape_cast %260 : vector<8xf32> to vector<8x1xf32>
    %262 = vector.broadcast %261 : vector<8x1xf32> to vector<8x8xf32>
    %263 = arith.subf %259, %262 : vector<8x8xf32>
    %264 = math.exp %263 : vector<8x8xf32>
    %cst_97 = arith.constant dense<0.000000e+00> : vector<8xf32>
    %265 = vector.multi_reduction <add>, %264, %cst_97 [1] : vector<8x8xf32> to vector<8xf32>
    %266 = vector.shape_cast %265 : vector<8xf32> to vector<8x1xf32>
    %267 = tpu.reciprocal %266 {approx = true} : vector<8x1xf32> -> vector<8x1xf32>
    %268 = vector.broadcast %267 : vector<8x1xf32> to vector<8x8xf32>
    %269 = arith.mulf %264, %268 : vector<8x8xf32>
    %270 = arith.truncf %269 : vector<8x8xf32> to vector<8x8xbf16>
    %271 = vector.extract_strided_slice %256 {offsets = [0, 0], sizes = [8, 8], strides = [1, 1]} : vector<8x32xbf16> to vector<8x8xbf16>
    %cst_98 = arith.constant dense<0.000000e+00> : vector<8x8xf32>
    %272 = tpu.matmul %270, %271, %cst_98 {dimension_numbers = #tpu.dot_dimension_numbers<[1], [0], [0], [1], [0, 0, 1, 1], [], []>} : vector<8x8xbf16>, vector<8x8xbf16>, vector<8x8xf32> -> vector<8x8xf32>
    %273 = arith.truncf %272 : vector<8x8xf32> to vector<8x8xbf16>
    %274 = vector.extract_strided_slice %252 {offsets = [0, 8], sizes = [8, 8], strides = [1, 1]} : vector<8x32xbf16> to vector<8x8xbf16>
    %275 = vector.extract_strided_slice %254 {offsets = [0, 8], sizes = [8, 8], strides = [1, 1]} : vector<8x32xbf16> to vector<8x8xbf16>
    %cst_99 = arith.constant dense<0.000000e+00> : vector<8x8xf32>
    %276 = tpu.matmul %274, %275, %cst_99 {dimension_numbers = #tpu.dot_dimension_numbers<[1], [1], [0], [0], [0, 0, 1, 0], [], []>} : vector<8x8xbf16>, vector<8x8xbf16>, vector<8x8xf32> -> vector<8x8xf32>
    %cst_100 = arith.constant dense<0xFF800000> : vector<8xf32>
    %277 = vector.multi_reduction <maximumf>, %276, %cst_100 [1] : vector<8x8xf32> to vector<8xf32>
    %278 = vector.shape_cast %277 : vector<8xf32> to vector<8x1xf32>
    %279 = vector.broadcast %278 : vector<8x1xf32> to vector<8x8xf32>
    %280 = arith.subf %276, %279 : vector<8x8xf32>
    %281 = math.exp %280 : vector<8x8xf32>
    %cst_101 = arith.constant dense<0.000000e+00> : vector<8xf32>
    %282 = vector.multi_reduction <add>, %281, %cst_101 [1] : vector<8x8xf32> to vector<8xf32>
    %283 = vector.shape_cast %282 : vector<8xf32> to vector<8x1xf32>
    %284 = tpu.reciprocal %283 {approx = true} : vector<8x1xf32> -> vector<8x1xf32>
    %285 = vector.broadcast %284 : vector<8x1xf32> to vector<8x8xf32>
    %286 = arith.mulf %281, %285 : vector<8x8xf32>
    %287 = arith.truncf %286 : vector<8x8xf32> to vector<8x8xbf16>
    %288 = vector.extract_strided_slice %256 {offsets = [0, 8], sizes = [8, 8], strides = [1, 1]} : vector<8x32xbf16> to vector<8x8xbf16>
    %cst_102 = arith.constant dense<0.000000e+00> : vector<8x8xf32>
    %289 = tpu.matmul %287, %288, %cst_102 {dimension_numbers = #tpu.dot_dimension_numbers<[1], [0], [0], [1], [0, 0, 1, 1], [], []>} : vector<8x8xbf16>, vector<8x8xbf16>, vector<8x8xf32> -> vector<8x8xf32>
    %290 = arith.truncf %289 : vector<8x8xf32> to vector<8x8xbf16>
    %291 = vector.extract_strided_slice %252 {offsets = [0, 16], sizes = [8, 8], strides = [1, 1]} : vector<8x32xbf16> to vector<8x8xbf16>
    %292 = vector.extract_strided_slice %254 {offsets = [0, 16], sizes = [8, 8], strides = [1, 1]} : vector<8x32xbf16> to vector<8x8xbf16>
    %cst_103 = arith.constant dense<0.000000e+00> : vector<8x8xf32>
    %293 = tpu.matmul %291, %292, %cst_103 {dimension_numbers = #tpu.dot_dimension_numbers<[1], [1], [0], [0], [0, 0, 1, 0], [], []>} : vector<8x8xbf16>, vector<8x8xbf16>, vector<8x8xf32> -> vector<8x8xf32>
    %cst_104 = arith.constant dense<0xFF800000> : vector<8xf32>
    %294 = vector.multi_reduction <maximumf>, %293, %cst_104 [1] : vector<8x8xf32> to vector<8xf32>
    %295 = vector.shape_cast %294 : vector<8xf32> to vector<8x1xf32>
    %296 = vector.broadcast %295 : vector<8x1xf32> to vector<8x8xf32>
    %297 = arith.subf %293, %296 : vector<8x8xf32>
    %298 = math.exp %297 : vector<8x8xf32>
    %cst_105 = arith.constant dense<0.000000e+00> : vector<8xf32>
    %299 = vector.multi_reduction <add>, %298, %cst_105 [1] : vector<8x8xf32> to vector<8xf32>
    %300 = vector.shape_cast %299 : vector<8xf32> to vector<8x1xf32>
    %301 = tpu.reciprocal %300 {approx = true} : vector<8x1xf32> -> vector<8x1xf32>
    %302 = vector.broadcast %301 : vector<8x1xf32> to vector<8x8xf32>
    %303 = arith.mulf %298, %302 : vector<8x8xf32>
    %304 = arith.truncf %303 : vector<8x8xf32> to vector<8x8xbf16>
    %305 = vector.extract_strided_slice %256 {offsets = [0, 16], sizes = [8, 8], strides = [1, 1]} : vector<8x32xbf16> to vector<8x8xbf16>
    %cst_106 = arith.constant dense<0.000000e+00> : vector<8x8xf32>
    %306 = tpu.matmul %304, %305, %cst_106 {dimension_numbers = #tpu.dot_dimension_numbers<[1], [0], [0], [1], [0, 0, 1, 1], [], []>} : vector<8x8xbf16>, vector<8x8xbf16>, vector<8x8xf32> -> vector<8x8xf32>
    %307 = arith.truncf %306 : vector<8x8xf32> to vector<8x8xbf16>
    %308 = vector.extract_strided_slice %252 {offsets = [0, 24], sizes = [8, 8], strides = [1, 1]} : vector<8x32xbf16> to vector<8x8xbf16>
    %309 = vector.extract_strided_slice %254 {offsets = [0, 24], sizes = [8, 8], strides = [1, 1]} : vector<8x32xbf16> to vector<8x8xbf16>
    %cst_107 = arith.constant dense<0.000000e+00> : vector<8x8xf32>
    %310 = tpu.matmul %308, %309, %cst_107 {dimension_numbers = #tpu.dot_dimension_numbers<[1], [1], [0], [0], [0, 0, 1, 0], [], []>} : vector<8x8xbf16>, vector<8x8xbf16>, vector<8x8xf32> -> vector<8x8xf32>
    %cst_108 = arith.constant dense<0xFF800000> : vector<8xf32>
    %311 = vector.multi_reduction <maximumf>, %310, %cst_108 [1] : vector<8x8xf32> to vector<8xf32>
    %312 = vector.shape_cast %311 : vector<8xf32> to vector<8x1xf32>
    %313 = vector.broadcast %312 : vector<8x1xf32> to vector<8x8xf32>
    %314 = arith.subf %310, %313 : vector<8x8xf32>
    %315 = math.exp %314 : vector<8x8xf32>
    %cst_109 = arith.constant dense<0.000000e+00> : vector<8xf32>
    %316 = vector.multi_reduction <add>, %315, %cst_109 [1] : vector<8x8xf32> to vector<8xf32>
    %317 = vector.shape_cast %316 : vector<8xf32> to vector<8x1xf32>
    %318 = tpu.reciprocal %317 {approx = true} : vector<8x1xf32> -> vector<8x1xf32>
    %319 = vector.broadcast %318 : vector<8x1xf32> to vector<8x8xf32>
    %320 = arith.mulf %315, %319 : vector<8x8xf32>
    %321 = arith.truncf %320 : vector<8x8xf32> to vector<8x8xbf16>
    %322 = vector.extract_strided_slice %256 {offsets = [0, 24], sizes = [8, 8], strides = [1, 1]} : vector<8x32xbf16> to vector<8x8xbf16>
    %cst_110 = arith.constant dense<0.000000e+00> : vector<8x8xf32>
    %323 = tpu.matmul %321, %322, %cst_110 {dimension_numbers = #tpu.dot_dimension_numbers<[1], [0], [0], [1], [0, 0, 1, 1], [], []>} : vector<8x8xbf16>, vector<8x8xbf16>, vector<8x8xf32> -> vector<8x8xf32>
    %324 = arith.truncf %323 : vector<8x8xf32> to vector<8x8xbf16>
    %325 = tpu.concatenate %273, %290, %307, %324 in 1 : vector<8x8xbf16>, vector<8x8xbf16>, vector<8x8xbf16>, vector<8x8xbf16> -> vector<8x32xbf16>
    %c1_111 = arith.constant 1 : index
    %c0_112 = arith.constant 0 : index
    %c0_113 = arith.constant 0 : index
    %326 = vector.load %arg6[%c1_111, %c0_112, %c0_113] : memref<2x32x32xbf16, #tpu.memory_space<vmem>>, vector<1x32x32xbf16>
    %327 = vector.shape_cast %326 : vector<1x32x32xbf16> to vector<32x32xbf16>
    %cst_114 = arith.constant dense<0.000000e+00> : vector<8x32xf32>
    %328 = tpu.matmul %325, %327, %cst_114 {dimension_numbers = #tpu.dot_dimension_numbers<[1], [0], [0], [1], [0, 0, 1, 1], [], []>} : vector<8x32xbf16>, vector<32x32xbf16>, vector<8x32xf32> -> vector<8x32xf32>
    %329 = arith.addf %219, %328 : vector<8x32xf32>
    %c15 = arith.constant 15 : index
    %c0_115 = arith.constant 0 : index
    %330 = vector.load %arg9[%c15, %c0_115] : memref<20x128xf32, #tpu.memory_space<vmem>>, vector<1x32xf32>
    %331 = vector.broadcast %330 : vector<1x32xf32> to vector<8x32xf32>
    %332 = arith.addf %329, %331 : vector<8x32xf32>
    %c16 = arith.constant 16 : index
    %c0_116 = arith.constant 0 : index
    %333 = vector.load %arg9[%c16, %c0_116] : memref<20x128xf32, #tpu.memory_space<vmem>>, vector<1x32xf32>
    %c17 = arith.constant 17 : index
    %c0_117 = arith.constant 0 : index
    %334 = vector.load %arg9[%c17, %c0_117] : memref<20x128xf32, #tpu.memory_space<vmem>>, vector<1x32xf32>
    %cst_118 = arith.constant dense<0.000000e+00> : vector<8xf32>
    %335 = vector.multi_reduction <add>, %332, %cst_118 [1] : vector<8x32xf32> to vector<8xf32>
    %336 = vector.shape_cast %335 : vector<8xf32> to vector<8x1xf32>
    %cst_119 = arith.constant 3.200000e+01 : f32
    %337 = vector.broadcast %cst_119 : f32 to vector<8x1xf32>
    %338 = arith.divf %336, %337 : vector<8x1xf32>
    %339 = vector.broadcast %338 : vector<8x1xf32> to vector<8x32xf32>
    %340 = arith.subf %332, %339 : vector<8x32xf32>
    %341 = arith.mulf %340, %340 : vector<8x32xf32>
    %cst_120 = arith.constant dense<0.000000e+00> : vector<8xf32>
    %342 = vector.multi_reduction <add>, %341, %cst_120 [1] : vector<8x32xf32> to vector<8xf32>
    %343 = vector.shape_cast %342 : vector<8xf32> to vector<8x1xf32>
    %cst_121 = arith.constant 3.200000e+01 : f32
    %344 = vector.broadcast %cst_121 : f32 to vector<8x1xf32>
    %345 = arith.divf %343, %344 : vector<8x1xf32>
    %346 = vector.broadcast %338 : vector<8x1xf32> to vector<8x32xf32>
    %347 = arith.subf %332, %346 : vector<8x32xf32>
    %cst_122 = arith.constant 9.99999974E-6 : f32
    %348 = vector.broadcast %cst_122 : f32 to vector<8x1xf32>
    %349 = arith.addf %345, %348 : vector<8x1xf32>
    %350 = math.rsqrt %349 : vector<8x1xf32>
    %351 = vector.broadcast %350 : vector<8x1xf32> to vector<8x32xf32>
    %352 = arith.mulf %347, %351 : vector<8x32xf32>
    %353 = vector.broadcast %333 : vector<1x32xf32> to vector<8x32xf32>
    %354 = arith.mulf %352, %353 : vector<8x32xf32>
    %355 = vector.broadcast %334 : vector<1x32xf32> to vector<8x32xf32>
    %356 = arith.addf %354, %355 : vector<8x32xf32>
    %357 = arith.truncf %356 : vector<8x32xf32> to vector<8x32xbf16>
    %c1_123 = arith.constant 1 : index
    %c0_124 = arith.constant 0 : index
    %c0_125 = arith.constant 0 : index
    %358 = vector.load %arg7[%c1_123, %c0_124, %c0_125] : memref<2x32x128xbf16, #tpu.memory_space<vmem>>, vector<1x32x128xbf16>
    %359 = vector.shape_cast %358 : vector<1x32x128xbf16> to vector<32x128xbf16>
    %cst_126 = arith.constant dense<0.000000e+00> : vector<8x128xf32>
    %360 = tpu.matmul %357, %359, %cst_126 {dimension_numbers = #tpu.dot_dimension_numbers<[1], [0], [0], [1], [0, 0, 1, 1], [], []>} : vector<8x32xbf16>, vector<32x128xbf16>, vector<8x128xf32> -> vector<8x128xf32>
    %c18 = arith.constant 18 : index
    %c0_127 = arith.constant 0 : index
    %361 = vector.load %arg9[%c18, %c0_127] : memref<20x128xf32, #tpu.memory_space<vmem>>, vector<1x128xf32>
    %362 = vector.broadcast %361 : vector<1x128xf32> to vector<8x128xf32>
    %363 = arith.addf %360, %362 : vector<8x128xf32>
    %cst_128 = arith.constant 5.000000e-01 : f32
    %364 = vector.broadcast %cst_128 : f32 to vector<8x128xf32>
    %365 = arith.mulf %364, %363 : vector<8x128xf32>
    %cst_129 = arith.constant 1.41421354 : f32
    %366 = vector.broadcast %cst_129 : f32 to vector<8x128xf32>
    %367 = arith.divf %363, %366 : vector<8x128xf32>
    %368 = math.erf %367 : vector<8x128xf32>
    %cst_130 = arith.constant 1.000000e+00 : f32
    %369 = vector.broadcast %cst_130 : f32 to vector<8x128xf32>
    %370 = arith.addf %369, %368 : vector<8x128xf32>
    %371 = arith.mulf %365, %370 : vector<8x128xf32>
    %372 = arith.truncf %371 : vector<8x128xf32> to vector<8x128xbf16>
    %c1_131 = arith.constant 1 : index
    %c0_132 = arith.constant 0 : index
    %c0_133 = arith.constant 0 : index
    %373 = vector.load %arg8[%c1_131, %c0_132, %c0_133] : memref<2x128x32xbf16, #tpu.memory_space<vmem>>, vector<1x128x32xbf16>
    %374 = vector.shape_cast %373 : vector<1x128x32xbf16> to vector<128x32xbf16>
    %cst_134 = arith.constant dense<0.000000e+00> : vector<8x32xf32>
    %375 = tpu.matmul %372, %374, %cst_134 {dimension_numbers = #tpu.dot_dimension_numbers<[1], [0], [0], [1], [0, 0, 1, 1], [], []>} : vector<8x128xbf16>, vector<128x32xbf16>, vector<8x32xf32> -> vector<8x32xf32>
    %376 = arith.addf %332, %375 : vector<8x32xf32>
    %c19 = arith.constant 19 : index
    %c0_135 = arith.constant 0 : index
    %377 = vector.load %arg9[%c19, %c0_135] : memref<20x128xf32, #tpu.memory_space<vmem>>, vector<1x32xf32>
    %378 = vector.broadcast %377 : vector<1x32xf32> to vector<8x32xf32>
    %379 = arith.addf %376, %378 : vector<8x32xf32>
    %380 = tpu.concatenate %219, %379 in 1 : vector<8x32xf32>, vector<8x32xf32> -> vector<8x64xf32>
    %c2 = arith.constant 2 : index
    %c0_136 = arith.constant 0 : index
    %381 = vector.load %arg9[%c2, %c0_136] : memref<20x128xf32, #tpu.memory_space<vmem>>, vector<1x64xf32>
    %c3 = arith.constant 3 : index
    %c0_137 = arith.constant 0 : index
    %382 = vector.load %arg9[%c3, %c0_137] : memref<20x128xf32, #tpu.memory_space<vmem>>, vector<1x64xf32>
    %cst_138 = arith.constant dense<0.000000e+00> : vector<8xf32>
    %383 = vector.multi_reduction <add>, %380, %cst_138 [1] : vector<8x64xf32> to vector<8xf32>
    %384 = vector.shape_cast %383 : vector<8xf32> to vector<8x1xf32>
    %cst_139 = arith.constant 6.400000e+01 : f32
    %385 = vector.broadcast %cst_139 : f32 to vector<8x1xf32>
    %386 = arith.divf %384, %385 : vector<8x1xf32>
    %387 = vector.broadcast %386 : vector<8x1xf32> to vector<8x64xf32>
    %388 = arith.subf %380, %387 : vector<8x64xf32>
    %389 = arith.mulf %388, %388 : vector<8x64xf32>
    %cst_140 = arith.constant dense<0.000000e+00> : vector<8xf32>
    %390 = vector.multi_reduction <add>, %389, %cst_140 [1] : vector<8x64xf32> to vector<8xf32>
    %391 = vector.shape_cast %390 : vector<8xf32> to vector<8x1xf32>
    %cst_141 = arith.constant 6.400000e+01 : f32
    %392 = vector.broadcast %cst_141 : f32 to vector<8x1xf32>
    %393 = arith.divf %391, %392 : vector<8x1xf32>
    %394 = vector.broadcast %386 : vector<8x1xf32> to vector<8x64xf32>
    %395 = arith.subf %380, %394 : vector<8x64xf32>
    %cst_142 = arith.constant 9.99999974E-6 : f32
    %396 = vector.broadcast %cst_142 : f32 to vector<8x1xf32>
    %397 = arith.addf %393, %396 : vector<8x1xf32>
    %398 = math.rsqrt %397 : vector<8x1xf32>
    %399 = vector.broadcast %398 : vector<8x1xf32> to vector<8x64xf32>
    %400 = arith.mulf %395, %399 : vector<8x64xf32>
    %401 = vector.broadcast %381 : vector<1x64xf32> to vector<8x64xf32>
    %402 = arith.mulf %400, %401 : vector<8x64xf32>
    %403 = vector.broadcast %382 : vector<1x64xf32> to vector<8x64xf32>
    %404 = arith.addf %402, %403 : vector<8x64xf32>
    %cst_143 = arith.constant 0.000000e+00 : f32
    %405 = vector.broadcast %cst_143 : f32 to vector<8x64xf32>
    %406 = tpu.concatenate %404, %405 in 1 : vector<8x64xf32>, vector<8x64xf32> -> vector<8x128xf32>
    %c0_144 = arith.constant 0 : index
    %c0_145 = arith.constant 0 : index
    %c0_146 = arith.constant 0 : index
    %407 = vector.load %arg10[%c0_144, %c0_145, %c0_146] : memref<1x8x128xf32, #tpu.memory_space<vmem>>, vector<1x8x128xf32>
    %408 = vector.shape_cast %407 : vector<1x8x128xf32> to vector<8x128xf32>
    %409 = vector.shape_cast %406 : vector<8x128xf32> to vector<1x8x128xf32>
    tpu.vector_store %arg10[%c0_144, %c0_145, %c0_146], %409 {strides = array<i32>} : memref<1x8x128xf32, #tpu.memory_space<vmem>>, vector<1x8x128xf32>,
    return
  }
  func.func @transform_0(%arg0: i32) -> (i32, i32, i32) {
    %c0_i32 = arith.constant 0 : i32
    %c0_i32_0 = arith.constant 0 : i32
    %c0_i32_1 = arith.constant 0 : i32
    return %arg0, %c0_i32, %c0_i32_0 : i32, i32, i32
  }
  func.func @transform_1(%arg0: i32) -> (i32, i32) {
    %c0_i32 = arith.constant 0 : i32
    %c0_i32_0 = arith.constant 0 : i32
    %c0_i32_1 = arith.constant 0 : i32
    return %c0_i32, %c0_i32_0 : i32, i32
  }
  func.func @transform_2(%arg0: i32) -> (i32, i32) {
    %c0_i32 = arith.constant 0 : i32
    %c0_i32_0 = arith.constant 0 : i32
    %c0_i32_1 = arith.constant 0 : i32
    return %c0_i32, %c0_i32_0 : i32, i32
  }
  func.func @transform_3(%arg0: i32) -> (i32, i32) {
    %c0_i32 = arith.constant 0 : i32
    %c0_i32_0 = arith.constant 0 : i32
    %c0_i32_1 = arith.constant 0 : i32
    return %c0_i32, %c0_i32_0 : i32, i32
  }
  func.func @transform_4(%arg0: i32) -> (i32, i32, i32) {
    %c0_i32 = arith.constant 0 : i32
    %c0_i32_0 = arith.constant 0 : i32
    %c0_i32_1 = arith.constant 0 : i32
    %c0_i32_2 = arith.constant 0 : i32
    return %c0_i32, %c0_i32_0, %c0_i32_1 : i32, i32, i32
  }
  func.func @transform_5(%arg0: i32) -> (i32, i32, i32) {
    %c0_i32 = arith.constant 0 : i32
    %c0_i32_0 = arith.constant 0 : i32
    %c0_i32_1 = arith.constant 0 : i32
    %c0_i32_2 = arith.constant 0 : i32
    return %c0_i32, %c0_i32_0, %c0_i32_1 : i32, i32, i32
  }
  func.func @transform_6(%arg0: i32) -> (i32, i32, i32) {
    %c0_i32 = arith.constant 0 : i32
    %c0_i32_0 = arith.constant 0 : i32
    %c0_i32_1 = arith.constant 0 : i32
    %c0_i32_2 = arith.constant 0 : i32
    return %c0_i32, %c0_i32_0, %c0_i32_1 : i32, i32, i32
  }
  func.func @transform_7(%arg0: i32) -> (i32, i32, i32) {
    %c0_i32 = arith.constant 0 : i32
    %c0_i32_0 = arith.constant 0 : i32
    %c0_i32_1 = arith.constant 0 : i32
    %c0_i32_2 = arith.constant 0 : i32
    return %c0_i32, %c0_i32_0, %c0_i32_1 : i32, i32, i32
  }
  func.func @transform_8(%arg0: i32) -> (i32, i32) {
    %c0_i32 = arith.constant 0 : i32
    %c0_i32_0 = arith.constant 0 : i32
    %c0_i32_1 = arith.constant 0 : i32
    return %c0_i32, %c0_i32_0 : i32, i32
  }
  func.func @transform_9(%arg0: i32) -> (i32, i32, i32) {
    %c0_i32 = arith.constant 0 : i32
    %c0_i32_0 = arith.constant 0 : i32
    %c0_i32_1 = arith.constant 0 : i32
    return %arg0, %c0_i32, %c0_i32_0 : i32, i32, i32
  }
}

</mosaic_0001>

<bundles_post_ra>
// kernel: audio_encoder_forward.1
= control target key start
LH: loop header
LB: loop body
LE: loop exit
PB: predicated region body
PF: predicated region fallthrough
CT: control target
= control target key end

     0   :  { %14 = vsyncpa [#allocation4], 0  ;;  %s2843_s0 = inlined_call_operand.vmem [shape: f32[2,16,8], index: 0, kind: input, shape index: {}]   ;;  %s2844_s1 = inlined_call_operand.vmem [shape: bf16[24,32], index: 1, kind: input, shape index: {}]   ;;  %s2845_s2 = inlined_call_operand.vmem [shape: bf16[96,32], index: 2, kind: input, shape index: {}]   ;;  %s2846_s3 = inlined_call_operand.vmem [shape: f32[8,32], index: 3, kind: input, shape index: {}]   ;;  %s2847_s4 = inlined_call_operand.vmem [shape: bf16[2,32,96], index: 4, kind: input, shape index: {}]   ;;  %s2848_s5 = inlined_call_operand.vmem [shape: bf16[2,32,32], index: 5, kind: input, shape index: {}]   ;;  %s2849_s6 = inlined_call_operand.vmem [shape: bf16[2,32,128], index: 6, kind: input, shape index: {}]   ;;  %s2850_s7 = inlined_call_operand.vmem [shape: bf16[2,128,32], index: 7, kind: input, shape index: {}]   ;;  %s2851_s8 = inlined_call_operand.vmem [shape: f32[20,128], index: 8, kind: input, shape index: {}]   ;;  %s2852_s9 = inlined_call_operand.hbm [shape: f32[2,8,128], index: 9, kind: output, shape index: {}]  }
   0x1   :  { %16 = vsyncpa [#allocation4 + $0x1], 0  ;;  %s2377_s30 = smov 0   ;;  %s2379_s10 = smov 0  }
   0x2   :  { %s2381_s11 = smov 0   ;;  %s2383_s12 = smov 0  }
   0x3 LB: > { %s2398_s13 = sadd.s32 4294967295, %s2307_s12   ;;  %s1856_s14 = sadd.s32 4294967294, %s2307_s12   ;;  %s2307_s12 = sphi %s2383_s12, %s2880_s12   ;;  %s2303_s11 = sphi %s2381_s11, %s2879_s11   ;;  %s2299_s10 = sphi %s2379_s10, %s2878_s10   ;;  %s2295_s30 = sphi %s2377_s30, %s2877_s30  }
   0x4   : > { %s2402_s15 = sadd.s32 1, %s2307_s12   ;;  %s223_s16 = sadd.s32 1, %s2303_s11 }
   0x5   : > { %s220_s17 = ssub.s32 %s2307_s12, %s2402_s15  ;;  %p233_p0 = scmp.ne.s32.totalorder %s2303_s11, %s2299_s10 }
   0x6   : > { %p221_p1 = scmp.eq.s32.totalorder %s220_s17, 0  ;;  %p234_p2 = scmp.eq.s32.totalorder %s2398_s13, 1 }
   0x7   : > { %p239_p3 = scmp.ne.s32.totalorder %s2299_s10, %s2295_s30  ;;  %p240_p4 = scmp.eq.s32.totalorder %s1856_s14, 1 }
   0x8   : > { %s2413_s18 = scalar_select %p221_p1, %s2303_s11, %s223_s16  }
   0x9   : > { %p2415_p5 = por %p234_p2, %p233_p0  ;;  %p2419_p6 = por %p240_p4, %p239_p3 }
   0xa   : > { %p1859_p7 = scmp.ge.s32.totalorder %s2307_s12, 1  ;;  %p290_p8 = scmp.lt.s32.totalorder %s2307_s12, 3 }
   0xc   : > { %p291_p9 = pnand %p1859_p7, %p290_p8 }
   0xd   : > { %p326_p10 = scmp.lt.s32.totalorder (!%p291_p9), %s2398_s13, 1  ;;  %s2854_s26 = smov (!%p291_p9), 8  }
   0xe   : > { %294 = sbr.rel (%p291_p9) target bundleno = 5561 (0x15b9), region = 56  ;;  %s2860_s27 = smov (!%p291_p9), 16  }
   0xf   : > { %s2853_s14 = smov (!%p291_p9), 32   ;;  %s2313_s16 = smov (!%p291_p9), 64  }
  0x10   : > { %s2863_s24 = smov (!%p291_p9), 88   ;;  %s2317_s28 = smov (!%p291_p9), 120  }
  0x11   : > { %s2318_s29 = smov (!%p291_p9), 72   ;;  %s2862_s17 = smov (!%p291_p9), 80  }
  0x12   : > { %s2858_s23 = smov (!%p291_p9), 112  }
  0x13   : > { %v334_v0 = vlaneseq  ;;  %s327_s21 = scalar_select %p326_p10, %s2398_s13, 1  ;;  %v388_v16 = vld [vmem:[%s2844_s1 + $0x8] sm:$0xf]  ;;  %vm404_vm3 = vcmask 1043456   ;;  %v2065_v20 = vld [vmem:[%s2844_s1] sm:$0xff]  ;;  %vm379_vm5 = vcmask 64512  }
  0x14   : > { %v396_v17 = vunpack.c.l.b16 %v388_v16  ;;  %vm382_vm6 = vcmask 130048   ;;  %vm400_vm7 = vcmask 195584   ;;  %v2311_v33 = vmov 1.4142135   ;;  %v2167_v39 = vld [vmem:[%s2851_s8] ss:$0 sm:$0xff] }
  0x15   : > { %v2427_v1 = vshrl.u32 %v334_v0, 7  ;;  %s2064_s22 = sshll.u32 %s327_s21, 4  ;;  %2187 = vrcp.f32 %v2311_v33  ;;  %vm517_vm14 = vcmask 261120   ;;  %s2859_s21 = smov 104  }
  0x16   : > { %s330_s25 = scalar_lea.vmem %s2843_s0, %s2064_s22  ;;  %v398_v18 = vpack.c.b16 %v396_v17, %v396_v17  ;;  %s2857_s22 = smov 56  }
  0x17   : > { %v336_v2 = vadd.s32 8, %v2427_v1  ;;  %v332_v3 = vld [vmem:[%s330_s25] sm:$0xff]  ;;  %v333_v4 = vld [vmem:[%s330_s25 + $0x8] sm:$0xff]  ;;  %vm354_vm0 = vcmp.lt.s32.totalorder %v2427_v1, 7  ;;  %vm341_vm2 = vcmp.lt.s32.totalorder %v2427_v1, 1  ;;  %vm337_vm4 = vcmp.eq.s32.totalorder %v2427_v1, 0 }
  0x18   : > { %v353_v5 = vrot.slane %v333_v4, 1  ;;  %v2157_v6 = vpack.i.bf16 %v333_v4, %v332_v3  ;;  %v352_v7 = vrot.slane %v332_v3, 1  ;;  %v340_v12 = vrot.slane %v333_v4, 7  ;;  %s2316_s25 = smov 96  }
  0x19   : > { %vm351_vm1 = vcmp.eq.s32.totalorder %v336_v2, 15  ;;  %v339_v13 = vrot.slane %v332_v3, 7  ;;  %v406_v19 = vsel %vm404_vm3, %v398_v18, 0 }
  0x1a   : > { %2158 = vrot.lane.b32.xlu0 %v2157_v6, %s2854_s26  ;;  %v355_v8 = vsel %vm354_vm0, %v352_v7, %v353_v5  ;;  %v356_v9 = vsel %vm354_vm0, %v353_v5, %v352_v7  ;;  %414 = vmatpush.bf16.msra.mxu0 %v406_v19 }
  0x1b   : > { %v362_v10 = vsel %vm351_vm1, 0.0, %v356_v9  ;;  %v342_v14 = vsel %vm341_vm2, %v339_v13, %v340_v12  ;;  %v343_v15 = vsel %vm341_vm2, %v340_v12, %v339_v13  ;;  %v2188_v34 = vpop.eup %2187  ;;  %vm534_vm2 = vcmask 523264  }
  0x1c   : > { %v2162_v11 = vpack.i.bf16 %v362_v10, %v355_v8  ;;  %v348_v24 = vsel %vm337_vm4, 0.0, %v343_v15  ;;  %v425_v35 = vmul.f32 1.4142135, %v2188_v34  ;;  %vm429_vm8 = vweird.f32 %v2188_v34 }
  0x1e   : > { %415 = vmatpush.bf16.msra.mxu0 %v2065_v20  ;;  %v426_v36 = vsub.f32 1.0, %v425_v35 }
  0x20   : > { %v427_v37 = vmul.f32 %v2188_v34, %v426_v36 }
  0x22   : > { %2163 = vrot.lane.b32.xlu0 %v2162_v11, %s2860_s27  ;;  %v428_v38 = vadd.f32 %v2188_v34, %v427_v37 }
  0x24   : > { %v2455_v41 = vsel %vm429_vm8, %v2188_v34, %v428_v38  ;;  %vm587_vm8 = vcmask 785408  }
  0x8c   : > { %v2159_v21 = vpop.permute.xlu0 %2158 }
  0x8d   : > { %v2161_v22 = vunpack.i.h.bf16 %v2159_v21  ;;  %v2160_v23 = vunpack.i.l.bf16 %v2159_v21 }
  0x8f   : > { %v380_v28 = vsel %vm379_vm5, %v348_v24, %v2160_v23  ;;  %v381_v29 = vsel %vm379_vm5, %v342_v14, %v2161_v22 }
  0x94   : > { %v2164_v25 = vpop.permute.xlu0 %2163 }
  0x95   : > { %v2166_v26 = vunpack.i.h.bf16 %v2164_v25  ;;  %v2165_v27 = vunpack.i.l.bf16 %v2164_v25 }
  0x97   : > { %v383_v30 = vsel %vm382_vm6, %v380_v28, %v2165_v27  ;;  %v384_v31 = vsel %vm382_vm6, %v381_v29, %v2166_v26 }
  0x98   : > { %v385_v32 = vpack.c.bf16 %v384_v31, %v383_v30 }
  0x9a   : > { %1867 = vmatmul.msk.bf16.vlgmr.msra.gmra.mxu0 %vm400_vm7, %v385_v32 }
 0x117   : > { %v417_v40 = vpop.f32.mrf.mxu0 }
 0x118   : > { %v2457_v42 = vadd.f32 %v2167_v39, %v417_v40 }
 0x11a   : > { %v431_v43 = vmul.f32 %v2455_v41, %v2457_v42 }
 0x11c   : > { %v433_v44 = vmul.f32 %v431_v43, %v431_v43 }
 0x11e   : > { %v434_v45 = vmin.f32 %v433_v44, 16.0 }
 0x11f   : > { %v419_v46 = vpop.f32.mrf.mxu0 }
 0x120   : > { %v435_v47 = vmul.f32 2.1237322e-06, %v434_v45  ;;  %v446_v48 = vmul.f32 3.8918573e-05, %v434_v45  ;;  %v2461_v49 = vadd.f32 %v2167_v39, %v419_v46 }
 0x122   : > { %v436_v50 = vadd.f32 0.00028619796, %v435_v47  ;;  %v447_v51 = vadd.f32 0.001143296, %v446_v48  ;;  %v2465_v52 = vmul.f32 %v2455_v41, %v2461_v49 }
 0x124   : > { %v437_v53 = vmul.f32 %v436_v50, %v434_v45  ;;  %v448_v54 = vmul.f32 %v447_v51, %v434_v45  ;;  %v473_v55 = vmul.f32 %v2465_v52, %v2465_v52 }
 0x126   : > { %v449_v56 = vadd.f32 0.014752088, %v448_v54  ;;  %v474_v57 = vmin.f32 %v473_v55, 16.0  ;;  %v438_v58 = vadd.f32 0.0036580483, %v437_v53  ;;  %v422_v53 = vmul.f32 0.5, %v2457_v42 }
 0x128   : > { %v450_v59 = vmul.f32 %v449_v56, %v434_v45  ;;  %v475_v60 = vmul.f32 2.1237322e-06, %v474_v57  ;;  %v486_v61 = vmul.f32 3.8918573e-05, %v474_v57  ;;  %v439_v0 = vmul.f32 %v438_v58, %v434_v45 }
 0x12a   : > { %v451_v62 = vadd.f32 0.112945676, %v450_v59  ;;  %v476_v63 = vadd.f32 0.00028619796, %v475_v60  ;;  %v487_v2 = vadd.f32 0.001143296, %v486_v61 }
 0x12b   : > { %v440_v7 = vadd.f32 0.05243302, %v439_v0  ;;  %v2069_v60 = vld [vmem:[%s2845_s2 + $0x18] sm:$0xff] }
 0x12c   : > { %v452_v3 = vmul.f32 %v451_v62, %v434_v45  ;;  %v477_v4 = vmul.f32 %v476_v63, %v474_v57  ;;  %v488_v5 = vmul.f32 %v487_v2, %v474_v57  ;;  %v423_v63 = vmul.f32 0.5, %v2461_v49  ;;  %v2067_v49 = vld [vmem:[%s2845_s2 + $0x8] sm:$0xff] }
 0x12d   : > { %v441_v13 = vmul.f32 %v440_v7, %v434_v45 }
 0x12e   : > { %v453_v6 = vadd.f32 0.4994258, %v452_v3  ;;  %v489_v8 = vadd.f32 0.014752088, %v488_v5  ;;  %v478_v10 = vadd.f32 0.0036580483, %v477_v4 }
 0x12f   : > { %v442_v17 = vadd.f32 0.18741608, %v441_v13  ;;  %v2068_v4 = vld [vmem:[%s2845_s2 + $0x10] sm:$0xff]  ;;  %v2066_v5 = vld [vmem:[%s2845_s2] sm:$0xff] }
 0x130   : > { %v454_v9 = vmul.f32 %v453_v6, %v434_v45  ;;  %v490_v11 = vmul.f32 %v489_v8, %v474_v57  ;;  %v479_v15 = vmul.f32 %v478_v10, %v474_v57  ;;  %v2168_v13 = vld [vmem:[%s2851_s8 + $0x1] ss:$0 sm:$0xff] }
 0x131   : > { %v443_v22 = vmul.f32 %v442_v17, %v434_v45  ;;  %v2071_v45 = vld [vmem:[%s2845_s2 + $0x28] sm:$0xff] }
 0x132   : > { %v455_v12 = vadd.f32 1.0, %v454_v9  ;;  %v491_v14 = vadd.f32 0.112945676, %v490_v11  ;;  %v480_v19 = vadd.f32 0.05243302, %v479_v15  ;;  %593 = vmatpush.bf16.msra.mxu1 %v2071_v45 }
 0x133   : > { %v444_v28 = vadd.f32 1.1283791, %v443_v22 }
 0x134   : > { %2189 = vrcp.f32 %v455_v12  ;;  %v492_v16 = vmul.f32 %v491_v14, %v474_v57  ;;  %v481_v25 = vmul.f32 %v480_v19, %v474_v57  ;;  %v467_v27 = vand.u32 2147483648, %v455_v12 }
 0x135   : > { %v465_v30 = vand.u32 2147483647, %v455_v12  ;;  %vm461_vm10 = vweird.f32 %v455_v12  ;;  %v445_v35 = vmul.f32 %v444_v28, %v431_v43  ;;  %v2070_v43 = vld [vmem:[%s2845_s2 + $0x20] sm:$0xff] }
 0x136   : > { %v493_v18 = vadd.f32 0.4994258, %v492_v16  ;;  %v482_v31 = vadd.f32 0.18741608, %v481_v25  ;;  %v468_v33 = vor.u32 1.1754944e-38, %v467_v27  ;;  %594 = vmatpush.bf16.msra.mxu1 %v2070_v43 }
 0x137   : > { %vm466_vm12 = vcmp.eq.f32.partialorder %v465_v30, 8.507059e+37 }
 0x138   : > { %v494_v20 = vmul.f32 %v493_v18, %v474_v57  ;;  %v483_v38 = vmul.f32 %v482_v31, %v474_v57 }
 0x13a   : > { %v2190_v21 = vpop.eup %2189  ;;  %v495_v24 = vadd.f32 1.0, %v494_v20  ;;  %v484_v48 = vadd.f32 1.1283791, %v483_v38  ;;  %595 = vmatpush.bf16.msra.mxu1 %v2069_v60 }
 0x13b   : > { %v457_v23 = vmul.f32 %v2190_v21, %v455_v12  ;;  %vm462_vm9 = vweird.f32 %v2190_v21 }
 0x13c   : > { %2191 = vrcp.f32 %v495_v24  ;;  %vm463_vm11 = vmor %vm461_vm10, %vm462_vm9  ;;  %v507_v47 = vand.u32 2147483648, %v495_v24  ;;  %v505_v51 = vand.u32 2147483647, %v495_v24  ;;  %vm501_vm15 = vweird.f32 %v495_v24 }
 0x13d   : > { %v458_v26 = vsub.f32 1.0, %v457_v23  ;;  %v485_v58 = vmul.f32 %v484_v48, %v2465_v52 }
 0x13e   : > { %v508_v57 = vor.u32 1.1754944e-38, %v507_v47  ;;  %vm506_vm1 = vcmp.eq.f32.partialorder %v505_v51, 8.507059e+37  ;;  %596 = vmatpush.bf16.msra.mxu1 %v2068_v4 }
 0x13f   : > { %v459_v29 = vmul.f32 %v2190_v21, %v458_v26 }
 0x141   : > { %v460_v32 = vadd.f32 %v2190_v21, %v459_v29 }
 0x142   : > { %v2192_v34 = vpop.eup %2191  ;;  %597 = vmatpush.bf16.msra.mxu1 %v2067_v49 }
 0x143   : > { %v464_v36 = vsel %vm463_vm11, %v2190_v21, %v460_v32  ;;  %v497_v39 = vmul.f32 %v2192_v34, %v495_v24  ;;  %vm502_vm13 = vweird.f32 %v2192_v34 }
 0x144   : > { %v469_v37 = vsel %vm466_vm12, %v468_v33, %v464_v36  ;;  %vm503_vm0 = vmor %vm501_vm15, %vm502_vm13 }
 0x145   : > { %v470_v40 = vmul.f32 %v469_v37, %v445_v35  ;;  %v498_v44 = vsub.f32 1.0, %v497_v39 }
 0x146   : > { %598 = vmatpush.bf16.msra.mxu1 %v2066_v5 }
 0x147   : > { %v1868_v46 = vclamps-f32 %v470_v40, 1.0  ;;  %v499_v50 = vmul.f32 %v2192_v34, %v498_v44 }
 0x149   : > { %v513_v54 = vadd.f32 1.0, %v1868_v46  ;;  %v500_v55 = vadd.f32 %v2192_v34, %v499_v50 }
 0x14b   : > { %v515_v56 = vmul.f32 %v513_v54, %v422_v53  ;;  %v504_v59 = vsel %vm503_vm0, %v2192_v34, %v500_v55 }
 0x14c   : > { %v509_v61 = vsel %vm506_vm1, %v508_v57, %v504_v59 }
 0x14d   : > { %518 = vst.msk [vmem:[#allocation2] sm:$0xff] %vm517_vm14, %v515_v56  ;;  %v510_v42 = vmul.f32 %v509_v61, %v485_v58  ;;  %v648_v58 = vld [vmem:[%s2846_s3] sm:$0xff] }
 0x14f   : > { %v1869_v62 = vclamps-f32 %v510_v42, 1.0  ;;  %v2314_v42 = vmov 32.0  }
 0x151   : > { %v514_v0 = vadd.f32 1.0, %v1869_v62 }
 0x153   : > { %v516_v2 = vmul.f32 %v514_v0, %v423_v63 }
 0x155   : > { %519 = vst.msk [vmem:[#allocation2 + $0x8] sm:$0xff] %vm517_vm14, %v516_v2 }
 0x15c   : > { %v520_v52 = vld [vmem:[#allocation2] ss:$2 sm:$0xff]  ;;  %v522_v3 = vld [vmem:[#allocation2 + $0x1] ss:$2 sm:$0xff] }
 0x15d   : > { %526 = vrot.lane.b32.xlu1 %v520_v52, %s2853_s14  ;;  %v523_v7 = vrot.slane %v522_v3, 7  ;;  %s2855_s14 = smov 40  }
 0x15f   : > { %v524_v8 = vsel %vm337_vm4, 0.0, %v523_v7 }
 0x165   : > { %530 = vrot.lane.b32.xlu1 %v522_v3, %s2313_s16 }
 0x1cf   : > { %v527_v6 = vpop.permute.xlu1 %526 }
 0x1d0   : > { %v533_v9 = vsel %vm517_vm14, %v524_v8, %v527_v6  ;;  %v2073_v8 = vld [vmem:[%s2847_s4 + $0x8] sm:$0xff] }
 0x1d1   : > { %713 = vmatpush.bf16.msra.mxu2 %v2073_v8 }
 0x1d7   : > { %v531_v10 = vpop.permute.xlu1 %530 }
 0x1d8   : > { %v535_v11 = vsel %vm534_vm2, %v533_v9, %v531_v10  ;;  %v2072_v9 = vld [vmem:[%s2847_s4] sm:$0xff] }
 0x1d9   : > { %v536_v12 = vpack.c.bf16 %v535_v11, %v535_v11  ;;  %714 = vmatpush.bf16.msra.mxu2 %v2072_v9 }
 0x1db   : > { %1894 = vmatmul.msk.bf16.vlgmr.msra.gmra.mxu1 %vm587_vm8, %v536_v12 }
 0x258   : > { %v600_v14 = vpop.f32.mrf.mxu1 }
 0x259   : > { %v601_v15 = vadd.f32 %v2168_v13, %v600_v14 }
 0x25b   : > { %v605_v16 = vmul.f32 %v601_v15, %v2455_v41  ;;  %v604_v56 = vmul.f32 0.5, %v601_v15 }
 0x25d   : > { %v606_v17 = vmul.f32 %v605_v16, %v605_v16 }
 0x25f   : > { %v607_v18 = vmin.f32 %v606_v17, 16.0 }
 0x260   : > { %v602_v1 = vpop.f32.mrf.mxu1 }
 0x261   : > { %v608_v19 = vmul.f32 2.1237322e-06, %v607_v18  ;;  %v619_v20 = vmul.f32 3.8918573e-05, %v607_v18  ;;  %v2169_v1 = vld [vmem:[%s2851_s8 + $0x4] ss:$0 sm:$0xff] }
 0x263   : > { %v609_v21 = vadd.f32 0.00028619796, %v608_v19  ;;  %v620_v22 = vadd.f32 0.001143296, %v619_v20 }
 0x265   : > { %v610_v23 = vmul.f32 %v609_v21, %v607_v18  ;;  %v621_v24 = vmul.f32 %v620_v22, %v607_v18  ;;  %v2170_v21 = vld [vmem:[%s2851_s8 + $0x5] ss:$0 sm:$0xff] }
 0x267   : > { %v622_v25 = vadd.f32 0.014752088, %v621_v24  ;;  %v611_v26 = vadd.f32 0.0036580483, %v610_v23 }
 0x269   : > { %v623_v27 = vmul.f32 %v622_v25, %v607_v18  ;;  %v612_v29 = vmul.f32 %v611_v26, %v607_v18  ;;  %v2171_v25 = vld [vmem:[%s2851_s8 + $0x6] ss:$0 sm:$0xff] }
 0x26b   : > { %v624_v28 = vadd.f32 0.112945676, %v623_v27  ;;  %v613_v32 = vadd.f32 0.05243302, %v612_v29 }
 0x26d   : > { %v625_v30 = vmul.f32 %v624_v28, %v607_v18  ;;  %v614_v35 = vmul.f32 %v613_v32, %v607_v18 }
 0x26f   : > { %v626_v31 = vadd.f32 0.4994258, %v625_v30  ;;  %v615_v36 = vadd.f32 0.18741608, %v614_v35 }
 0x271   : > { %v627_v33 = vmul.f32 %v626_v31, %v607_v18  ;;  %v616_v38 = vmul.f32 %v615_v36, %v607_v18 }
 0x273   : > { %v628_v34 = vadd.f32 1.0, %v627_v33  ;;  %v617_v45 = vadd.f32 1.1283791, %v616_v38 }
 0x275   : > { %2193 = vrcp.f32 %v628_v34  ;;  %v640_v44 = vand.u32 2147483648, %v628_v34  ;;  %v638_v47 = vand.u32 2147483647, %v628_v34  ;;  %vm634_vm9 = vweird.f32 %v628_v34 }
 0x276   : > { %v618_v51 = vmul.f32 %v617_v45, %v605_v16  ;;  %2195 = vrcp.f32 %v2314_v42 }
 0x277   : > { %v641_v50 = vor.u32 1.1754944e-38, %v640_v44  ;;  %vm639_vm11 = vcmp.eq.f32.partialorder %v638_v47, 8.507059e+37 }
 0x27b   : > { %v2194_v37 = vpop.eup %2193 }
 0x27c   : > { %v630_v39 = vmul.f32 %v2194_v37, %v628_v34  ;;  %vm635_vm4 = vweird.f32 %v2194_v37  ;;  %v2196_v62 = vpop.eup %2195 }
 0x27d   : > { %vm636_vm10 = vmor %vm634_vm9, %vm635_vm4  ;;  %v656_v63 = vmul.f32 32.0, %v2196_v62  ;;  %vm660_vm12 = vweird.f32 %v2196_v62 }
 0x27e   : > { %v631_v40 = vsub.f32 1.0, %v630_v39 }
 0x27f   : > { %v657_v0 = vsub.f32 1.0, %v656_v63 }
 0x280   : > { %v632_v46 = vmul.f32 %v2194_v37, %v631_v40 }
 0x281   : > { %v658_v2 = vmul.f32 %v2196_v62, %v657_v0 }
 0x282   : > { %v633_v48 = vadd.f32 %v2194_v37, %v632_v46 }
 0x283   : > { %v659_v52 = vadd.f32 %v2196_v62, %v658_v2 }
 0x284   : > { %v637_v43 = vsel %vm636_vm10, %v2194_v37, %v633_v48 }
 0x285   : > { %v642_v53 = vsel %vm639_vm11, %v641_v50, %v637_v43  ;;  %v2509_v3 = vsel %vm660_vm12, %v2196_v62, %v659_v52 }
 0x286   : > { %v643_v54 = vmul.f32 %v642_v53, %v618_v51 }
 0x288   : > { %v1895_v55 = vclamps-f32 %v643_v54, 1.0 }
 0x28a   : > { %v646_v57 = vadd.f32 1.0, %v1895_v55 }
 0x28c   : > { %v647_v59 = vmul.f32 %v646_v57, %v604_v56 }
 0x28e   : > { %v2505_v60 = vadd.f32 %v648_v58, %v647_v59 }
 0x290   : > { %v652_v61 = vsel %vm517_vm14, %v2505_v60, 0.0 }
 0x291   : > { %653 = vadd.xlane.f32.xlu2 %v652_v61 }
 0x304   : > { %v654_v4 = vpop.xlane.xlu2 %653 }
 0x305   : > { %v662_v49 = vmul.f32 %v2509_v3, %v654_v4 }
 0x307   : > { %v663_v5 = vsub.f32 %v2505_v60, %v662_v49 }
 0x309   : > { %v664_v6 = vmul.f32 %v663_v5, %v663_v5 }
 0x30b   : > { %v665_v7 = vsel %vm517_vm14, %v664_v6, 0.0 }
 0x30c   : > { %666 = vadd.xlane.f32.xlu2 %v665_v7 }
 0x37f   : > { %v667_v10 = vpop.xlane.xlu2 %666 }
 0x380   : > { %v668_v11 = vmul.f32 %v667_v10, %v2509_v3 }
 0x382   : > { %v669_v12 = vadd.f32 1e-05, %v668_v11 }
 0x384   : > { %2197 = vrsqrt.f32 %v669_v12  ;;  %vm676_vm15 = vweird.f32 %v669_v12 }
 0x38a   : > { %v2198_v13 = vpop.eup %2197 }
 0x38b   : > { %v671_v14 = vmul.f32 %v2198_v13, %v669_v12  ;;  %vm677_vm13 = vweird.f32 %v2198_v13 }
 0x38c   : > { %vm678_vm0 = vmor %vm676_vm15, %vm677_vm13 }
 0x38d   : > { %v672_v15 = vmul.f32 %v2198_v13, %v671_v14 }
 0x38f   : > { %v673_v16 = vmul.f32 0.5, %v672_v15 }
 0x391   : > { %v674_v17 = vsub.f32 1.5, %v673_v16 }
 0x393   : > { %v675_v18 = vmul.f32 %v2198_v13, %v674_v17 }
 0x395   : > { %v679_v19 = vsel %vm678_vm0, %v2198_v13, %v675_v18 }
 0x396   : > { %v680_v20 = vmul.f32 %v679_v19, %v663_v5 }
 0x398   : > { %v682_v22 = vmul.f32 %v2169_v1, %v680_v20 }
 0x39a   : > { %v684_v23 = vadd.f32 %v2170_v21, %v682_v22 }
 0x39c   : > { %v685_v24 = vpack.c.bf16 %v684_v23, %v684_v23 }
 0x39e   : > { %1904 = vmatmul.msk.bf16.vlgmr.msra.gmra.mxu2 %vm517_vm14, %v685_v24 }
 0x421   : > { %v716_v26 = vpop.f32.mrf.mxu2 }
 0x422   : > { %v717_v27 = vadd.f32 %v2171_v25, %v716_v26 }
 0x424   : > { %v720_v28 = vpack.c.bf16 %v717_v27, %v717_v27 }
 0x426   : > { %v722_v29 = vunpack.c.l.b16 %v720_v28 }
 0x428   : > { %v2531_v30 = vpack.c.b16 %v722_v29, %v722_v29 }
 0x429   : > { %v718_v31 = vpop.f32.mrf.mxu2 }
 0x42a   : > { %781 = vrot.lane.b32.xlu2 %v2531_v30, %s2863_s24  ;;  %724 = vrot.lane.b32.xlu0 %v2531_v30, %s2316_s25  ;;  %s2874_s24 = smov 24  }
 0x432   : > { %779 = vrot.lane.b32.xlu2 %v2531_v30, %s2317_s28 }
 0x43a   : > { %757 = vrot.lane.b32.xlu2 %v2531_v30, %s2313_s16 }
 0x442   : > { %895 = vrot.lane.b32.xlu2 %v2531_v30, %s2318_s29 }
 0x44a   : > { %838 = vrot.lane.b32.xlu2 %v2531_v30, %s2862_s17  ;;  %s323_s17 = sand.u32 1, %s2299_s10  }
 0x484   : > { %v782_v32 = vpop.permute.xlu2 %781 }
 0x485   : > { %v787_v33 = vsel %vm379_vm5, %v782_v32, 0 }
 0x486   : > { %796 = vmatpush.bf16.xpose.msrb.mxu2 %v787_v33 }
 0x48c   : > { %v780_v34 = vpop.permute.xlu2 %779 }
 0x48d   : > { %1907 = vmatmul.msk.bf16.vlgmr.msrb.gmra.mxu2 %vm379_vm5, %v780_v34 }
 0x494   : > { %v758_v35 = vpop.permute.xlu2 %757 }
 0x495   : > { %v763_v36 = vsel %vm404_vm3, %v758_v35, 0 }
 0x496   : > { %772 = vmatpush.bf16.msrb.mxu0 %v763_v36 }
 0x49c   : > { %v896_v37 = vpop.permute.xlu2 %895  ;;  %v725_v38 = vpop.permute.xlu0 %724 }
 0x49d   : > { %v901_v39 = vsel %vm379_vm5, %v896_v37, 0  ;;  %v730_v40 = vsel %vm379_vm5, %v725_v38, 0 }
 0x49e   : > { %739 = vmatpush.bf16.xpose.msra.mxu3 %v730_v40  ;;  %910 = vmatpush.bf16.xpose.msra.mxu2 %v901_v39 }
 0x4a4   : > { %v839_v44 = vpop.permute.xlu2 %838 }
 0x4a5   : > { %v844_v45 = vsel %vm379_vm5, %v839_v44, 0  ;;  %1905 = vmatmul.msk.bf16.vlgmr.msra.gmra.mxu3 %vm379_vm5, %v720_v28 }
 0x4a6   : > { %853 = vmatpush.bf16.xpose.msra.mxu0 %v844_v45 }
 0x510   : > { %v798_v46 = vpop.f32.mrf.mxu2 }
 0x511   : > { %v802_v47 = vsel %vm379_vm5, %v798_v46, -inf }
 0x512   : > { %803 = vmax.xlane.f32.xlu2 %v802_v47 }
 0x518   : > { %v800_v48 = vpop.f32.mrf.mxu2 }
 0x528   : > { %v741_v50 = vpop.f32.mrf.mxu3 }
 0x529   : > { %v745_v51 = vsel %vm379_vm5, %v741_v50, -inf }
 0x52a   : > { %746 = vmax.xlane.f32.xlu1 %v745_v51 }
 0x530   : > { %v743_v43 = vpop.f32.mrf.mxu3 }
 0x543   : > { %893 = vrot.lane.b32.xlu1 %v2531_v30, %s2859_s21  ;;  %s2871_s21 = smov 40  }
 0x585   : > { %v804_v53 = vpop.xlane.xlu2 %803 }
 0x586   : > { %v805_v54 = vsub.f32 %v798_v46, %v804_v53 }
 0x588   : > { %v806_v55 = vmul.f32 1.442695, %v805_v54 }
 0x58a   : > { %2199 = vpow2.f32 %v806_v55  ;;  %v2074_v55 = vld [vmem:[%s2848_s5] sm:$0xff] }
 0x590   : > { %v2200_v56 = vpop.eup %2199 }
 0x591   : > { %v808_v57 = vsel %vm379_vm5, %v2200_v56, 0.0 }
 0x592   : > { %809 = vadd.xlane.f32.xlu2 %v808_v57 }
 0x59d   : > { %v747_v58 = vpop.xlane.xlu1 %746 }
 0x59e   : > { %v748_v59 = vsub.f32 %v741_v50, %v747_v58 }
 0x5a0   : > { %v749_v61 = vmul.f32 1.442695, %v748_v59 }
 0x5a2   : > { %2201 = vpow2.f32 %v749_v61 }
 0x5a8   : > { %v2202_v42 = vpop.eup %2201 }
 0x5a9   : > { %v751_v62 = vsel %vm379_vm5, %v2202_v42, 0.0 }
 0x5aa   : > { %814 = vrot.lane.b32.xlu2 %v2531_v30, %s2857_s22  ;;  %752 = vadd.xlane.f32.xlu0 %v751_v62  ;;  %s1860_s22 = sshll.u32 %s323_s17, 3 }
 0x5b5   : > { %v894_v63 = vpop.permute.xlu1 %893 }
 0x5b6   : > { %1911 = vmatmul.msk.bf16.vlgmr.msra.gmra.mxu2 %vm379_vm5, %v894_v63 }
 0x5be   : > { %836 = vrot.lane.b32.xlu0 %v2531_v30, %s2858_s23  ;;  %s2061_s23 = sshll.u32 %s2398_s13, 3  ;;  %s325_s13 = scalar_lea.vmem [#allocation3], %s1860_s22 }
 0x5bf   : > { %s2265_s22 = scalar_lea.hbm %s2852_s9, 16 }
 0x605   : > { %v810_v0 = vpop.xlane.xlu2 %809 }
 0x606   : > { %2203 = vrcp.f32 %v810_v0 }
 0x60c   : > { %v2204_v2 = vpop.eup %2203 }
 0x60d   : > { %v812_v52 = vmul.f32 %v2204_v2, %v2200_v56  ;;  %v815_v4 = vpop.permute.xlu2 %814 }
 0x60e   : > { %v820_v49 = vsel %vm404_vm3, %v815_v4, 0 }
 0x60f   : > { %829 = vmatpush.bf16.msrb.mxu3 %v820_v49  ;;  %v813_v5 = vpack.c.bf16 %v812_v52, %v812_v52  ;;  %v2172_v49 = vld [vmem:[%s2851_s8 + $0x7] ss:$0 sm:$0xff] }
 0x612   : > { %1908 = vmatmul.msk.bf16.vlgmr.msrb.gmra.mxu3 %vm379_vm5, %v813_v5 }
 0x61d   : > { %v753_v6 = vpop.xlane.xlu0 %752 }
 0x61e   : > { %2205 = vrcp.f32 %v753_v6 }
 0x624   : > { %v2206_v7 = vpop.eup %2205 }
 0x625   : > { %v755_v8 = vmul.f32 %v2206_v7, %v2202_v42 }
 0x627   : > { %v756_v9 = vpack.c.bf16 %v755_v8, %v755_v8 }
 0x629   : > { %1906 = vmatmul.msk.bf16.vlgmr.msrb.gmra.mxu0 %vm379_vm5, %v756_v9 }
 0x630   : > { %v837_v10 = vpop.permute.xlu0 %836 }
 0x639   : > { %1909 = vmatmul.msk.bf16.vlgmr.msra.gmra.mxu0 %vm379_vm5, %v837_v10  ;;  %v912_v11 = vpop.f32.mrf.mxu2 }
 0x63a   : > { %v916_v12 = vsel %vm379_vm5, %v912_v11, -inf }
 0x63b   : > { %917 = vmax.xlane.f32.xlu1 %v916_v12 }
 0x641   : > { %v914_v13 = vpop.f32.mrf.mxu2 }
 0x695   : > { %v831_v14 = vpop.f32.mrf.mxu3 }
 0x696   : > { %v835_v15 = vpack.c.bf16 %v831_v14, %v831_v14 }
 0x698   : > { %v951_v16 = vunpack.c.l.b16 %v835_v15  ;;  %v2076_v15 = vld [vmem:[%s2849_s6] sm:$0xff] }
 0x69a   : > { %v952_v17 = vpack.c.b16 %v951_v16, %v951_v16 }
 0x69c   : > { %953 = vrot.lane.b32.xlu2 %v952_v17, %s2854_s26  ;;  %s2856_s26 = smov 48  }
 0x69d   : > { %v833_v18 = vpop.f32.mrf.mxu3 }
 0x6a6   : > { %v2569_v1 = vpop.f32.mrf.mxu0 }
 0x6a7   : > { %v778_v62 = vpack.c.bf16 %v2569_v1, %v2569_v1 }
 0x6ae   : > { %v776_v19 = vpop.f32.mrf.mxu0  ;;  %v918_v20 = vpop.xlane.xlu1 %917 }
 0x6af   : > { %v919_v21 = vsub.f32 %v912_v11, %v918_v20 }
 0x6b1   : > { %v920_v22 = vmul.f32 1.442695, %v919_v21 }
 0x6b3   : > { %2207 = vpow2.f32 %v920_v22 }
 0x6b6   : > { %v855_v23 = vpop.f32.mrf.mxu0 }
 0x6b7   : > { %v859_v24 = vsel %vm379_vm5, %v855_v23, -inf }
 0x6b8   : > { %860 = vmax.xlane.f32.xlu0 %v859_v24  ;;  %v2173_v24 = vld [vmem:[%s2851_s8 + $0x8] ss:$0 sm:$0xff] }
 0x6b9   : > { %v2208_v25 = vpop.eup %2207 }
 0x6ba   : > { %v922_v26 = vsel %vm379_vm5, %v2208_v25, 0.0 }
 0x6bb   : > { %923 = vadd.xlane.f32.xlu1 %v922_v26 }
 0x6be   : > { %v857_v27 = vpop.f32.mrf.mxu0 }
 0x6bf   : > { %v2174_v27 = vld [vmem:[%s2851_s8 + $0x9] ss:$0 sm:$0xff] }
 0x6d4   : > { %928 = vrot.lane.b32.xlu1 %v2531_v30, %s2855_s14  ;;  %s2861_s14 = smov 24  }
 0x6f6   : > { %v954_v42 = vpop.permute.xlu2 %953 }
 0x6f7   : > { %v967_v63 = vsel %vm379_vm5, %v778_v62, %v954_v42 }
 0x72b   : > { %v861_v28 = vpop.xlane.xlu0 %860 }
 0x72c   : > { %v862_v29 = vsub.f32 %v855_v23, %v861_v28 }
 0x72e   : > { %v863_v31 = vmul.f32 1.442695, %v862_v29  ;;  %v924_v34 = vpop.xlane.xlu1 %923 }
 0x730   : > { %2209 = vpow2.f32 %v863_v31 }
 0x731   : > { %2211 = vrcp.f32 %v924_v34  ;;  %v2175_v34 = vld [vmem:[%s2851_s8 + $0xa] ss:$0 sm:$0xff] }
 0x736   : > { %v2210_v32 = vpop.eup %2209 }
 0x737   : > { %v865_v33 = vsel %vm379_vm5, %v2210_v32, 0.0  ;;  %v2212_v35 = vpop.eup %2211 }
 0x738   : > { %866 = vadd.xlane.f32.xlu0 %v865_v33  ;;  %v926_v36 = vmul.f32 %v2212_v35, %v2208_v25  ;;  %v2084_v33 = vld [vmem:[%s2850_s7 + $0x30] sm:$0xff] }
 0x73a   : > { %v927_v39 = vpack.c.bf16 %v926_v36, %v926_v36  ;;  %v2083_v36 = vld [vmem:[%s2850_s7 + $0x28] sm:$0xff] }
 0x746   : > { %v929_v37 = vpop.permute.xlu1 %928 }
 0x747   : > { %v934_v38 = vsel %vm404_vm3, %v929_v37, 0 }
 0x748   : > { %943 = vmatpush.bf16.msra.mxu3 %v934_v38 }
 0x74b   : > { %1912 = vmatmul.msk.bf16.vlgmr.msra.gmra.mxu3 %vm379_vm5, %v927_v39  ;;  %v2082_v39 = vld [vmem:[%s2850_s7 + $0x20] sm:$0xff] }
 0x74c   : > { %871 = vrot.lane.b32.xlu0 %v2531_v30, %s2856_s26  ;;  %v2075_v30 = vld [vmem:[%s2848_s5 + $0x8] sm:$0xff]  ;;  %s2870_s26 = smov 56  }
 0x74d   : > { %996 = vmatpush.bf16.msrb.mxu0 %v2075_v30 }
 0x751   : > { %997 = vmatpush.bf16.msrb.mxu0 %v2074_v55 }
 0x7ab   : > { %v867_v40 = vpop.xlane.xlu0 %866 }
 0x7ac   : > { %2213 = vrcp.f32 %v867_v40 }
 0x7b2   : > { %v2214_v44 = vpop.eup %2213 }
 0x7b3   : > { %v869_v45 = vmul.f32 %v2214_v44, %v2210_v32  ;;  %v2085_v32 = vld [vmem:[%s2850_s7 + $0x38] sm:$0xff] }
 0x7b4   : > { %1179 = vmatpush.bf16.msrb.mxu2 %v2085_v32 }
 0x7b5   : > { %v870_v48 = vpack.c.bf16 %v869_v45, %v869_v45 }
 0x7b8   : > { %1180 = vmatpush.bf16.msrb.mxu2 %v2084_v33 }
 0x7bc   : > { %1181 = vmatpush.bf16.msrb.mxu2 %v2083_v36 }
 0x7be   : > { %v872_v46 = vpop.permute.xlu0 %871 }
 0x7bf   : > { %v877_v47 = vsel %vm404_vm3, %v872_v46, 0  ;;  %v2081_v46 = vld [vmem:[%s2850_s7 + $0x18] sm:$0xff] }
 0x7c0   : > { %886 = vmatpush.bf16.msrb.mxu1 %v877_v47  ;;  %1182 = vmatpush.bf16.msrb.mxu2 %v2082_v39 }
 0x7c3   : > { %1910 = vmatmul.msk.bf16.vlgmr.msrb.gmra.mxu1 %vm379_vm5, %v870_v48 }
 0x7c4   : > { %1183 = vmatpush.bf16.msrb.mxu2 %v2081_v46 }
 0x7ce   : > { %v945_v50 = vpop.f32.mrf.mxu3 }
 0x7cf   : > { %v949_v51 = vpack.c.bf16 %v945_v50, %v945_v50 }
 0x7d1   : > { %v961_v43 = vunpack.c.l.b16 %v949_v51 }
 0x7d3   : > { %v962_v53 = vpack.c.b16 %v961_v43, %v961_v43  ;;  %v2080_v43 = vld [vmem:[%s2850_s7 + $0x10] sm:$0xff] }
 0x7d4   : > { %1184 = vmatpush.bf16.msrb.mxu2 %v2080_v43 }
 0x7d5   : > { %963 = vrot.lane.b32.xlu0 %v962_v53, %s2861_s14  ;;  %s2873_s14 = smov 8  }
 0x7d6   : > { %v947_v54 = vpop.f32.mrf.mxu3 }
 0x840   : > { %v888_v56 = vpop.f32.mrf.mxu1 }
 0x841   : > { %v892_v57 = vpack.c.bf16 %v888_v56, %v888_v56  ;;  %v2079_v56 = vld [vmem:[%s2850_s7 + $0x8] sm:$0xff] }
 0x842   : > { %1185 = vmatpush.bf16.msrb.mxu2 %v2079_v56 }
 0x843   : > { %v956_v58 = vunpack.c.l.b16 %v892_v57 }
 0x845   : > { %v957_v59 = vpack.c.b16 %v956_v58, %v956_v58 }
 0x847   : > { %958 = vrot.lane.b32.xlu2 %v957_v59, %s2860_s27  ;;  %v964_v2 = vpop.permute.xlu0 %963  ;;  %s2872_s27 = smov 48  }
 0x848   : > { %v890_v61 = vpop.f32.mrf.mxu1 }
 0x849   : > { %v2078_v61 = vld [vmem:[%s2850_s7] sm:$0xff] }
 0x84a   : > { %1186 = vmatpush.bf16.msrb.mxu2 %v2078_v61 }
 0x8a1   : > { %v959_v0 = vpop.permute.xlu2 %958 }
 0x8a2   : > { %v969_v52 = vsel %vm382_vm6, %v967_v63, %v959_v0 }
 0x8a3   : > { %v971_v4 = vsel %vm400_vm7, %v969_v52, %v964_v2 }
 0x8a4   : > { %1921 = vmatmul.msk.bf16.vlgmr.msrb.gmra.mxu0 %vm517_vm14, %v971_v4 }
 0x921   : > { %v999_v5 = vpop.f32.mrf.mxu0 }
 0x922   : > { %v1003_v6 = vadd.f32 %v999_v5, %v2505_v60  ;;  %v2077_v60 = vld [vmem:[%s2849_s6 + $0x8] sm:$0xff] }
 0x923   : > { %1063 = vmatpush.bf16.msra.mxu1 %v2077_v60 }
 0x924   : > { %v2600_v7 = vadd.f32 %v2172_v49, %v1003_v6 }
 0x926   : > { %v1009_v8 = vsel %vm517_vm14, %v2600_v7, 0.0 }
 0x927   : > { %1010 = vadd.xlane.f32.xlu1 %v1009_v8  ;;  %1064 = vmatpush.bf16.msra.mxu1 %v2076_v15 }
 0x929   : > { %v1001_v9 = vpop.f32.mrf.mxu0 }
 0x99a   : > { %v1011_v10 = vpop.xlane.xlu1 %1010 }
 0x99b   : > { %v1012_v11 = vmul.f32 %v1011_v10, %v2509_v3 }
 0x99d   : > { %v1013_v12 = vsub.f32 %v2600_v7, %v1012_v11 }
 0x99f   : > { %v1014_v13 = vmul.f32 %v1013_v12, %v1013_v12 }
 0x9a1   : > { %v1015_v14 = vsel %vm517_vm14, %v1014_v13, 0.0 }
 0x9a2   : > { %1016 = vadd.xlane.f32.xlu2 %v1015_v14 }
 0xa15   : > { %v1017_v16 = vpop.xlane.xlu2 %1016 }
 0xa16   : > { %v1018_v17 = vmul.f32 %v1017_v16, %v2509_v3 }
 0xa18   : > { %v1019_v18 = vadd.f32 1e-05, %v1018_v17 }
 0xa1a   : > { %2215 = vrsqrt.f32 %v1019_v18  ;;  %vm1026_vm8 = vweird.f32 %v1019_v18 }
 0xa20   : > { %v2216_v1 = vpop.eup %2215 }
 0xa21   : > { %v1021_v19 = vmul.f32 %v2216_v1, %v1019_v18  ;;  %vm1027_vm1 = vweird.f32 %v2216_v1 }
 0xa22   : > { %vm1028_vm4 = vmor %vm1026_vm8, %vm1027_vm1 }
 0xa23   : > { %v1022_v20 = vmul.f32 %v2216_v1, %v1021_v19 }
 0xa25   : > { %v1023_v21 = vmul.f32 0.5, %v1022_v20 }
 0xa27   : > { %v1024_v22 = vsub.f32 1.5, %v1023_v21 }
 0xa29   : > { %v1025_v23 = vmul.f32 %v2216_v1, %v1024_v22  ;;  %v2176_v22 = vld [vmem:[%s2851_s8 + $0xb] ss:$0 sm:$0xff] }
 0xa2b   : > { %v1029_v25 = vsel %vm1028_vm4, %v2216_v1, %v1025_v23 }
 0xa2c   : > { %v1030_v26 = vmul.f32 %v1029_v25, %v1013_v12 }
 0xa2e   : > { %v1032_v28 = vmul.f32 %v2173_v24, %v1030_v26 }
 0xa30   : > { %v1034_v29 = vadd.f32 %v2174_v27, %v1032_v28 }
 0xa32   : > { %v1035_v31 = vpack.c.bf16 %v1034_v29, %v1034_v29 }
 0xa34   : > { %1930 = vmatmul.msk.bf16.vlgmr.msra.gmra.mxu1 %vm517_vm14, %v1035_v31 }
 0xab1   : > { %v1066_v35 = vpop.f32.mrf.mxu1 }
 0xab2   : > { %v1067_v37 = vadd.f32 %v2175_v34, %v1066_v35  ;;  %v2086_v34 = vld [vmem:[%s2847_s4 + $0x10] sm:$0xff] }
 0xab4   : > { %v1071_v38 = vmul.f32 %v1067_v37, %v2455_v41  ;;  %v1070_v1 = vmul.f32 0.5, %v1067_v37 }
 0xab6   : > { %v1072_v40 = vmul.f32 %v1071_v38, %v1071_v38 }
 0xab8   : > { %v1073_v44 = vmin.f32 %v1072_v40, 16.0 }
 0xab9   : > { %v1068_v45 = vpop.f32.mrf.mxu1 }
 0xaba   : > { %v1074_v47 = vmul.f32 2.1237322e-06, %v1073_v44  ;;  %v1085_v48 = vmul.f32 3.8918573e-05, %v1073_v44 }
 0xabc   : > { %v1075_v50 = vadd.f32 0.00028619796, %v1074_v47  ;;  %v1086_v51 = vadd.f32 0.001143296, %v1085_v48  ;;  %v2177_v47 = vld [vmem:[%s2851_s8 + $0xc] ss:$0 sm:$0xff] }
 0xabe   : > { %v1076_v53 = vmul.f32 %v1075_v50, %v1073_v44  ;;  %v1087_v54 = vmul.f32 %v1086_v51, %v1073_v44  ;;  %v2178_v51 = vld [vmem:[%s2851_s8 + $0xd] ss:$0 sm:$0xff] }
 0xac0   : > { %v1088_v30 = vadd.f32 0.014752088, %v1087_v54  ;;  %v1077_v55 = vadd.f32 0.0036580483, %v1076_v53 }
 0xac2   : > { %v1089_v57 = vmul.f32 %v1088_v30, %v1073_v44  ;;  %v1078_v59 = vmul.f32 %v1077_v55, %v1073_v44  ;;  %v2179_v30 = vld [vmem:[%s2851_s8 + $0xe] ss:$0 sm:$0xff] }
 0xac4   : > { %v1090_v58 = vadd.f32 0.112945676, %v1089_v57  ;;  %v1079_v63 = vadd.f32 0.05243302, %v1078_v59 }
 0xac6   : > { %v1091_v42 = vmul.f32 %v1090_v58, %v1073_v44  ;;  %v1080_v52 = vmul.f32 %v1079_v63, %v1073_v44 }
 0xac8   : > { %v1092_v62 = vadd.f32 0.4994258, %v1091_v42  ;;  %v1081_v4 = vadd.f32 0.18741608, %v1080_v52 }
 0xaca   : > { %v1093_v0 = vmul.f32 %v1092_v62, %v1073_v44  ;;  %v1082_v5 = vmul.f32 %v1081_v4, %v1073_v44 }
 0xacc   : > { %v1094_v2 = vadd.f32 1.0, %v1093_v0  ;;  %v1083_v10 = vadd.f32 1.1283791, %v1082_v5 }
 0xace   : > { %2217 = vrcp.f32 %v1094_v2  ;;  %v1106_v9 = vand.u32 2147483648, %v1094_v2  ;;  %v1104_v12 = vand.u32 2147483647, %v1094_v2  ;;  %vm1100_vm10 = vweird.f32 %v1094_v2 }
 0xacf   : > { %v1084_v60 = vmul.f32 %v1083_v10, %v1071_v38 }
 0xad0   : > { %v1107_v14 = vor.u32 1.1754944e-38, %v1106_v9  ;;  %vm1105_vm12 = vcmp.eq.f32.partialorder %v1104_v12, 8.507059e+37 }
 0xad4   : > { %v2218_v49 = vpop.eup %2217 }
 0xad5   : > { %v1096_v6 = vmul.f32 %v2218_v49, %v1094_v2  ;;  %vm1101_vm9 = vweird.f32 %v2218_v49 }
 0xad6   : > { %vm1102_vm11 = vmor %vm1100_vm10, %vm1101_vm9 }
 0xad7   : > { %v1097_v8 = vsub.f32 1.0, %v1096_v6 }
 0xad9   : > { %v1098_v11 = vmul.f32 %v2218_v49, %v1097_v8 }
 0xadb   : > { %v1099_v13 = vadd.f32 %v2218_v49, %v1098_v11 }
 0xadd   : > { %v1103_v15 = vsel %vm1102_vm11, %v2218_v49, %v1099_v13 }
 0xade   : > { %v1108_v16 = vsel %vm1105_vm12, %v1107_v14, %v1103_v15 }
 0xadf   : > { %v1109_v17 = vmul.f32 %v1108_v16, %v1084_v60 }
 0xae1   : > { %v1931_v18 = vclamps-f32 %v1109_v17, 1.0 }
 0xae3   : > { %v1112_v19 = vadd.f32 1.0, %v1931_v18 }
 0xae5   : > { %v1113_v20 = vmul.f32 %v1112_v19, %v1070_v1 }
 0xae7   : > { %v1114_v21 = vpack.c.bf16 %v1113_v20, %v1113_v20 }
 0xae9   : > { %1187 = vmatmul.bf16.vlgmr.msrb.gmra.mxu2 %v1114_v21 }
 0xb6c   : > { %v1188_v23 = vpop.f32.mrf.mxu2 }
 0xb6d   : > { %v1192_v24 = vadd.f32 %v1188_v23, %v2600_v7  ;;  %v2087_v7 = vld [vmem:[%s2847_s4 + $0x18] sm:$0xff] }
 0xb6e   : > { %1253 = vmatpush.bf16.msrb.mxu3 %v2087_v7 }
 0xb6f   : > { %v2653_v25 = vadd.f32 %v2176_v22, %v1192_v24 }
 0xb71   : > { %v1198_v26 = vsel %vm517_vm14, %v2653_v25, 0.0 }
 0xb72   : > { %1199 = vadd.xlane.f32.xlu0 %v1198_v26  ;;  %1254 = vmatpush.bf16.msrb.mxu3 %v2086_v34 }
 0xb74   : > { %v1190_v27 = vpop.f32.mrf.mxu2 }
 0xbe5   : > { %v1200_v28 = vpop.xlane.xlu0 %1199 }
 0xbe6   : > { %v1201_v29 = vmul.f32 %v1200_v28, %v2509_v3 }
 0xbe8   : > { %v1202_v31 = vsub.f32 %v2653_v25, %v1201_v29 }
 0xbea   : > { %v1203_v32 = vmul.f32 %v1202_v31, %v1202_v31 }
 0xbec   : > { %v1204_v33 = vsel %vm517_vm14, %v1203_v32, 0.0 }
 0xbed   : > { %1205 = vadd.xlane.f32.xlu1 %v1204_v33 }
 0xc60   : > { %v1206_v35 = vpop.xlane.xlu1 %1205 }
 0xc61   : > { %v1207_v36 = vmul.f32 %v1206_v35, %v2509_v3 }
 0xc63   : > { %v1208_v37 = vadd.f32 1e-05, %v1207_v36 }
 0xc65   : > { %2219 = vrsqrt.f32 %v1208_v37  ;;  %vm1215_vm15 = vweird.f32 %v1208_v37 }
 0xc6b   : > { %v2220_v38 = vpop.eup %2219 }
 0xc6c   : > { %v1210_v39 = vmul.f32 %v2220_v38, %v1208_v37  ;;  %vm1216_vm13 = vweird.f32 %v2220_v38 }
 0xc6d   : > { %vm1217_vm0 = vmor %vm1215_vm15, %vm1216_vm13 }
 0xc6e   : > { %v1211_v40 = vmul.f32 %v2220_v38, %v1210_v39 }
 0xc70   : > { %v1212_v44 = vmul.f32 0.5, %v1211_v40 }
 0xc72   : > { %v1213_v45 = vsub.f32 1.5, %v1212_v44 }
 0xc74   : > { %v1214_v46 = vmul.f32 %v2220_v38, %v1213_v45 }
 0xc76   : > { %v1218_v48 = vsel %vm1217_vm0, %v2220_v38, %v1214_v46 }
 0xc77   : > { %v1219_v50 = vmul.f32 %v1218_v48, %v1202_v31 }
 0xc79   : > { %v1221_v43 = vmul.f32 %v2177_v47, %v1219_v50 }
 0xc7b   : > { %v1223_v53 = vadd.f32 %v2178_v51, %v1221_v43 }
 0xc7d   : > { %v1224_v54 = vpack.c.bf16 %v1223_v53, %v1223_v53 }
 0xc7f   : > { %1976 = vmatmul.msk.bf16.vlgmr.msrb.gmra.mxu3 %vm517_vm14, %v1224_v54 }
 0xd02   : > { %v1256_v55 = vpop.f32.mrf.mxu3 }
 0xd03   : > { %v1257_v56 = vadd.f32 %v2179_v30, %v1256_v55 }
 0xd05   : > { %v1260_v57 = vpack.c.bf16 %v1257_v56, %v1257_v56 }
 0xd07   : > { %v1262_v58 = vunpack.c.l.b16 %v1260_v57 }
 0xd09   : > { %v2677_v59 = vpack.c.b16 %v1262_v58, %v1262_v58 }
 0xd0a   : > { %v1258_v61 = vpop.f32.mrf.mxu3 }
 0xd0b   : > { %1297 = vrot.lane.b32.xlu1 %v2677_v59, %s2313_s16  ;;  %1264 = vrot.lane.b32.xlu2 %v2677_v59, %s2316_s25  ;;  %s2866_s16 = smov 88   ;;  %s2867_s25 = smov 80  }
 0xd13   : > { %1319 = vrot.lane.b32.xlu2 %v2677_v59, %s2317_s28  ;;  %s2868_s28 = smov 104  }
 0xd1b   : > { %1435 = vrot.lane.b32.xlu2 %v2677_v59, %s2318_s29  ;;  %s2869_s29 = smov 112  }
 0xd65   : > { %v1265_v42 = vpop.permute.xlu2 %1264 }
 0xd66   : > { %v1270_v62 = vsel %vm379_vm5, %v1265_v42, 0 }
 0xd67   : > { %1279 = vmatpush.bf16.xpose.msra.mxu0 %v1270_v62 }
 0xd6d   : > { %v1320_v8 = vpop.permute.xlu2 %1319 }
 0xd6e   : > { %1977 = vmatmul.msk.bf16.vlgmr.msra.gmra.mxu0 %vm379_vm5, %v1260_v57 }
 0xd75   : > { %v1436_v11 = vpop.permute.xlu2 %1435 }
 0xd76   : > { %v1441_v14 = vsel %vm379_vm5, %v1436_v11, 0 }
 0xd7d   : > { %v1298_v63 = vpop.permute.xlu1 %1297 }
 0xd7e   : > { %v1303_v0 = vsel %vm404_vm3, %v1298_v63, 0 }
 0xd7f   : > { %1312 = vmatpush.bf16.msrb.mxu1 %v1303_v0 }
 0xdeb   : > { %v1281_v2 = vpop.f32.mrf.mxu0 }
 0xdec   : > { %v1285_v52 = vsel %vm379_vm5, %v1281_v2, -inf }
 0xded   : > { %1286 = vmax.xlane.f32.xlu0 %v1285_v52 }
 0xdf3   : > { %v1283_v4 = vpop.f32.mrf.mxu0 }
 0xe01   : > { %1321 = vrot.lane.b32.xlu0 %v2677_v59, %s2866_s16  ;;  %s1782_s16 = scalar_lea.sflag [#allocation4], %s323_s17 }
 0xe09   : > { %1378 = vrot.lane.b32.xlu0 %v2677_v59, %s2867_s25  ;;  %s2875_s25 = smov 16  }
 0xe11   : > { %1433 = vrot.lane.b32.xlu0 %v2677_v59, %s2868_s28 }
 0xe60   : > { %v1287_v49 = vpop.xlane.xlu0 %1286 }
 0xe61   : > { %v1288_v5 = vsub.f32 %v1281_v2, %v1287_v49 }
 0xe63   : > { %v1289_v6 = vmul.f32 1.442695, %v1288_v5 }
 0xe65   : > { %2221 = vpow2.f32 %v1289_v6 }
 0xe6b   : > { %v2222_v9 = vpop.eup %2221 }
 0xe6c   : > { %v1291_v10 = vsel %vm379_vm5, %v2222_v9, 0.0 }
 0xe6d   : > { %1292 = vadd.xlane.f32.xlu1 %v1291_v10 }
 0xe73   : > { %v1322_v12 = vpop.permute.xlu0 %1321 }
 0xe74   : > { %v1327_v13 = vsel %vm379_vm5, %v1322_v12, 0 }
 0xe75   : > { %1336 = vmatpush.bf16.xpose.msra.mxu3 %v1327_v13 }
 0xe7b   : > { %v1379_v60 = vpop.permute.xlu0 %1378 }
 0xe7c   : > { %v1384_v15 = vsel %vm379_vm5, %v1379_v60, 0  ;;  %1979 = vmatmul.msk.bf16.vlgmr.msra.gmra.mxu3 %vm379_vm5, %v1320_v8 }
 0xe7d   : > { %1450 = vmatpush.bf16.xpose.msrb.mxu3 %v1441_v14  ;;  %1393 = vmatpush.bf16.xpose.msra.mxu1 %v1384_v15  ;;  %v2089_v15 = vld [vmem:[%s2848_s5 + $0x18] sm:$0xff] }
 0xe83   : > { %v1434_v16 = vpop.permute.xlu0 %1433 }
 0xe86   : > { %1376 = vrot.lane.b32.xlu1 %v2677_v59, %s2869_s29 }
 0xe8c   : > { %1983 = vmatmul.msk.bf16.vlgmr.msrb.gmra.mxu3 %vm379_vm5, %v1434_v16  ;;  %v2088_v16 = vld [vmem:[%s2848_s5 + $0x10] sm:$0xff] }
 0xee0   : > { %v1293_v17 = vpop.xlane.xlu1 %1292 }
 0xee1   : > { %2223 = vrcp.f32 %v1293_v17 }
 0xee7   : > { %v2224_v18 = vpop.eup %2223 }
 0xee8   : > { %v1295_v1 = vmul.f32 %v2224_v18, %v2222_v9 }
 0xeea   : > { %v1296_v19 = vpack.c.bf16 %v1295_v1, %v1295_v1 }
 0xeec   : > { %1978 = vmatmul.msk.bf16.vlgmr.msrb.gmra.mxu1 %vm379_vm5, %v1296_v19 }
 0xeed   : > { %1537 = vmatpush.bf16.msrb.mxu1 %v2089_v15 }
 0xef1   : > { %1538 = vmatpush.bf16.msrb.mxu1 %v2088_v16  ;;  %v2093_v16 = vld [vmem:[%s2850_s7 + $0x48] sm:$0xff] }
 0xef8   : > { %v1377_v20 = vpop.permute.xlu1 %1376 }
 0xefc   : > { %1981 = vmatmul.msk.bf16.vlgmr.msra.gmra.mxu1 %vm379_vm5, %v1377_v20 }
 0xeff   : > { %v1338_v21 = vpop.f32.mrf.mxu3 }
 0xf00   : > { %v1342_v22 = vsel %vm379_vm5, %v1338_v21, -inf }
 0xf01   : > { %1343 = vmax.xlane.f32.xlu2 %v1342_v22 }
 0xf07   : > { %v1340_v23 = vpop.f32.mrf.mxu3 }
 0xf0f   : > { %v1452_v24 = vpop.f32.mrf.mxu3 }
 0xf10   : > { %v1456_v26 = vsel %vm379_vm5, %v1452_v24, -inf }
 0xf11   : > { %1457 = vmax.xlane.f32.xlu0 %v1456_v26 }
 0xf17   : > { %v1454_v27 = vpop.f32.mrf.mxu3 }
 0xf69   : > { %v2709_v28 = vpop.f32.mrf.mxu1 }
 0xf6a   : > { %v1318_v22 = vpack.c.bf16 %v2709_v28, %v2709_v28 }
 0xf71   : > { %v1316_v29 = vpop.f32.mrf.mxu1 }
 0xf74   : > { %v1344_v31 = vpop.xlane.xlu2 %1343 }
 0xf75   : > { %v1345_v32 = vsub.f32 %v1338_v21, %v1344_v31  ;;  %v2180_v31 = vld [vmem:[%s2851_s8 + $0xf] ss:$0 sm:$0xff] }
 0xf77   : > { %v1346_v33 = vmul.f32 1.442695, %v1345_v32 }
 0xf79   : > { %2225 = vpow2.f32 %v1346_v33  ;;  %v1395_v7 = vpop.f32.mrf.mxu1 }
 0xf7a   : > { %v1399_v34 = vsel %vm379_vm5, %v1395_v7, -inf }
 0xf7b   : > { %1400 = vmax.xlane.f32.xlu1 %v1399_v34 }
 0xf7f   : > { %v2226_v35 = vpop.eup %2225 }
 0xf80   : > { %v1348_v36 = vsel %vm379_vm5, %v2226_v35, 0.0 }
 0xf81   : > { %v1397_v37 = vpop.f32.mrf.mxu1  ;;  %1349 = vadd.xlane.f32.xlu2 %v1348_v36 }
 0xf84   : > { %v1458_v38 = vpop.xlane.xlu0 %1457 }
 0xf85   : > { %v1459_v39 = vsub.f32 %v1452_v24, %v1458_v38 }
 0xf87   : > { %v1460_v40 = vmul.f32 1.442695, %v1459_v39 }
 0xf89   : > { %2227 = vpow2.f32 %v1460_v40  ;;  %v2091_v40 = vld [vmem:[%s2849_s6 + $0x18] sm:$0xff] }
 0xf8f   : > { %v2228_v44 = vpop.eup %2227 }
 0xf90   : > { %v1462_v45 = vsel %vm379_vm5, %v2228_v44, 0.0 }
 0xf91   : > { %1463 = vadd.xlane.f32.xlu0 %v1462_v45 }
 0xf94   : > { %1354 = vrot.lane.b32.xlu1 %v2677_v59, %s2870_s26  ;;  %s1792_s26 = scalar_lea.hbm %s2852_s9, %s2061_s23 }
 0xfa5   : > { %1468 = vrot.lane.b32.xlu0 %v2677_v59, %s2871_s21 }
 0xfee   : > { %v1401_v46 = vpop.xlane.xlu1 %1400 }
 0xfef   : > { %v1402_v47 = vsub.f32 %v1395_v7, %v1401_v46 }
 0xff1   : > { %v1403_v48 = vmul.f32 1.442695, %v1402_v47 }
 0xff3   : > { %2229 = vpow2.f32 %v1403_v48 }
 0xff4   : > { %v1350_v51 = vpop.xlane.xlu2 %1349 }
 0xff5   : > { %2231 = vrcp.f32 %v1350_v51 }
 0xff9   : > { %v2230_v50 = vpop.eup %2229 }
 0xffa   : > { %v1405_v43 = vsel %vm379_vm5, %v2230_v50, 0.0 }
 0xffb   : > { %1406 = vadd.xlane.f32.xlu2 %v1405_v43  ;;  %v2232_v53 = vpop.eup %2231 }
 0xffc   : > { %v1352_v54 = vmul.f32 %v2232_v53, %v2226_v35 }
 0xffe   : > { %v1353_v56 = vpack.c.bf16 %v1352_v54, %v1352_v54 }
0x1004   : > { %v1464_v57 = vpop.xlane.xlu0 %1463 }
0x1005   : > { %2233 = vrcp.f32 %v1464_v57 }
0x1006   : > { %v1355_v30 = vpop.permute.xlu1 %1354 }
0x1007   : > { %v1360_v55 = vsel %vm404_vm3, %v1355_v30, 0  ;;  %v2181_v30 = vld [vmem:[%s2851_s8 + $0x10] ss:$0 sm:$0xff] }
0x1008   : > { %1369 = vmatpush.bf16.msrb.mxu0 %v1360_v55 }
0x100b   : > { %1980 = vmatmul.msk.bf16.vlgmr.msrb.gmra.mxu0 %vm379_vm5, %v1353_v56  ;;  %v2234_v58 = vpop.eup %2233 }
0x100c   : > { %v1466_v61 = vmul.f32 %v2234_v58, %v2228_v44  ;;  %v2090_v44 = vld [vmem:[%s2849_s6 + $0x10] sm:$0xff] }
0x100e   : > { %v1467_v63 = vpack.c.bf16 %v1466_v61, %v1466_v61 }
0x1013   : > { %1411 = vrot.lane.b32.xlu2 %v2677_v59, %s2872_s27 }
0x1017   : > { %v1469_v42 = vpop.permute.xlu0 %1468 }
0x1018   : > { %v1474_v62 = vsel %vm404_vm3, %v1469_v42, 0  ;;  %v2099_v42 = vld [vmem:[%s2850_s7 + $0x78] sm:$0xff] }
0x1019   : > { %1483 = vmatpush.bf16.msra.mxu0 %v1474_v62  ;;  %1722 = vmatpush.bf16.msra.mxu3 %v2099_v42  ;;  %v2098_v62 = vld [vmem:[%s2850_s7 + $0x70] sm:$0xff] }
0x101c   : > { %1984 = vmatmul.msk.bf16.vlgmr.msra.gmra.mxu0 %vm379_vm5, %v1467_v63  ;;  %v2183_v63 = vld [vmem:[%s2851_s8 + $0x12] ss:$0 sm:$0xff] }
0x101d   : > { %1723 = vmatpush.bf16.msra.mxu3 %v2098_v62 }
0x106e   : > { %v1407_v0 = vpop.xlane.xlu2 %1406 }
0x106f   : > { %2235 = vrcp.f32 %v1407_v0 }
0x1075   : > { %v2236_v2 = vpop.eup %2235 }
0x1076   : > { %v1409_v52 = vmul.f32 %v2236_v2, %v2230_v50  ;;  %v1412_v4 = vpop.permute.xlu2 %1411  ;;  %v2097_v2 = vld [vmem:[%s2850_s7 + $0x68] sm:$0xff] }
0x1077   : > { %v1417_v49 = vsel %vm404_vm3, %v1412_v4, 0  ;;  %1724 = vmatpush.bf16.msra.mxu3 %v2097_v2 }
0x1078   : > { %v1410_v5 = vpack.c.bf16 %v1409_v52, %v1409_v52  ;;  %1426 = vmatpush.bf16.msra.mxu2 %v1417_v49  ;;  %v2096_v49 = vld [vmem:[%s2850_s7 + $0x60] sm:$0xff] }
0x107b   : > { %1982 = vmatmul.msk.bf16.vlgmr.msra.gmra.mxu2 %vm379_vm5, %v1410_v5  ;;  %1725 = vmatpush.bf16.msra.mxu3 %v2096_v49 }
0x107c   : > { %1605 = vmatpush.bf16.msrb.mxu2 %v2091_v40 }
0x1080   : > { %1606 = vmatpush.bf16.msrb.mxu2 %v2090_v44 }
0x1088   : > { %v1371_v59 = vpop.f32.mrf.mxu0 }
0x1089   : > { %v1375_v6 = vpack.c.bf16 %v1371_v59, %v1371_v59 }
0x108b   : > { %v1491_v8 = vunpack.c.l.b16 %v1375_v6 }
0x108d   : > { %v1492_v9 = vpack.c.b16 %v1491_v8, %v1491_v8  ;;  %v2095_v8 = vld [vmem:[%s2850_s7 + $0x58] sm:$0xff] }
0x108e   : > { %1726 = vmatpush.bf16.msra.mxu3 %v2095_v8 }
0x108f   : > { %1493 = vrot.lane.b32.xlu1 %v1492_v9, %s2873_s14  ;;  %s1794_s14 = sshll.u32 %s325_s13, 4  ;;  %s1795_s14 = int_to_ptr.vmem [resolvable:$true] %s1794_s14 }
0x1090   : > { %v1373_v10 = vpop.f32.mrf.mxu0 }
0x1099   : > { %v1485_v11 = vpop.f32.mrf.mxu0 }
0x109a   : > { %v1489_v12 = vpack.c.bf16 %v1485_v11, %v1485_v11 }
0x109c   : > { %v1501_v13 = vunpack.c.l.b16 %v1489_v12 }
0x109e   : > { %v1502_v14 = vpack.c.b16 %v1501_v13, %v1501_v13 }
0x10a0   : > { %1503 = vrot.lane.b32.xlu2 %v1502_v14, %s2874_s24  ;;  %s2876_s24 = smov 32  }
0x10a1   : > { %v1487_v60 = vpop.f32.mrf.mxu0 }
0x10fa   : > { %v1504_v26 = vpop.permute.xlu2 %1503 }
0x10fe   : > { %v1428_v17 = vpop.f32.mrf.mxu2 }
0x10ff   : > { %v1432_v18 = vpack.c.bf16 %v1428_v17, %v1428_v17 }
0x1101   : > { %v1496_v1 = vunpack.c.l.b16 %v1432_v18  ;;  %v1494_v21 = vpop.permute.xlu1 %1493 }
0x1102   : > { %v1507_v23 = vsel %vm379_vm5, %v1318_v22, %v1494_v21 }
0x1103   : > { %v1497_v19 = vpack.c.b16 %v1496_v1, %v1496_v1 }
0x1105   : > { %1498 = vrot.lane.b32.xlu0 %v1497_v19, %s2875_s25  ;;  %v2092_v19 = vld [vmem:[%s2850_s7 + $0x40] sm:$0xff] }
0x1106   : > { %v1430_v20 = vpop.f32.mrf.mxu2 }
0x1177   : > { %v1499_v24 = vpop.permute.xlu0 %1498 }
0x1178   : > { %v1509_v27 = vsel %vm382_vm6, %v1507_v23, %v1499_v24 }
0x1179   : > { %v1511_v29 = vsel %vm400_vm7, %v1509_v27, %v1504_v26 }
0x117a   : > { %1997 = vmatmul.msk.bf16.vlgmr.msrb.gmra.mxu1 %vm517_vm14, %v1511_v29 }
0x11f7   : > { %v1540_v32 = vpop.f32.mrf.mxu1 }
0x11f8   : > { %v1544_v33 = vadd.f32 %v1540_v32, %v2653_v25 }
0x11fa   : > { %v2746_v7 = vadd.f32 %v2180_v31, %v1544_v33 }
0x11fc   : > { %v1550_v28 = vsel %vm517_vm14, %v2746_v7, 0.0 }
0x11fd   : > { %1551 = vadd.xlane.f32.xlu1 %v1550_v28 }
0x11ff   : > { %v1542_v34 = vpop.f32.mrf.mxu1 }
0x1270   : > { %v1552_v35 = vpop.xlane.xlu1 %1551 }
0x1271   : > { %v1553_v36 = vmul.f32 %v1552_v35, %v2509_v3 }
0x1273   : > { %v1554_v37 = vsub.f32 %v2746_v7, %v1553_v36 }
0x1275   : > { %v1555_v38 = vmul.f32 %v1554_v37, %v1554_v37 }
0x1277   : > { %v1556_v39 = vsel %vm517_vm14, %v1555_v38, 0.0 }
0x1278   : > { %1557 = vadd.xlane.f32.xlu0 %v1556_v39 }
0x12eb   : > { %v1558_v45 = vpop.xlane.xlu0 %1557 }
0x12ec   : > { %v1559_v46 = vmul.f32 %v1558_v45, %v2509_v3  ;;  %v2182_v3 = vld [vmem:[%s2851_s8 + $0x11] ss:$0 sm:$0xff] }
0x12ee   : > { %v1560_v47 = vadd.f32 1e-05, %v1559_v46 }
0x12f0   : > { %2237 = vrsqrt.f32 %v1560_v47  ;;  %vm1567_vm5 = vweird.f32 %v1560_v47 }
0x12f6   : > { %v2238_v48 = vpop.eup %2237 }
0x12f7   : > { %v1562_v50 = vmul.f32 %v2238_v48, %v1560_v47  ;;  %vm1568_vm3 = vweird.f32 %v2238_v48 }
0x12f8   : > { %vm1569_vm6 = vmor %vm1567_vm5, %vm1568_vm3 }
0x12f9   : > { %v1563_v51 = vmul.f32 %v2238_v48, %v1562_v50 }
0x12fb   : > { %v1564_v43 = vmul.f32 0.5, %v1563_v51 }
0x12fd   : > { %v1565_v53 = vsub.f32 1.5, %v1564_v43  ;;  %v2184_v43 = vld [vmem:[%s2851_s8 + $0x13] ss:$0 sm:$0xff] }
0x12ff   : > { %v1566_v54 = vmul.f32 %v2238_v48, %v1565_v53 }
0x1301   : > { %v1570_v55 = vsel %vm1569_vm6, %v2238_v48, %v1566_v54 }
0x1302   : > { %v1571_v56 = vmul.f32 %v1570_v55, %v1554_v37 }
0x1304   : > { %v1573_v57 = vmul.f32 %v2181_v30, %v1571_v56 }
0x1306   : > { %v1575_v58 = vadd.f32 %v2182_v3, %v1573_v57 }
0x1308   : > { %v1576_v61 = vpack.c.bf16 %v1575_v58, %v1575_v58  ;;  %v2326_v58 = vmov 64.0  }
0x130a   : > { %2010 = vmatmul.msk.bf16.vlgmr.msrb.gmra.mxu2 %vm517_vm14, %v1576_v61 }
0x138d   : > { %v1608_v0 = vpop.f32.mrf.mxu2 }
0x138e   : > { %v1609_v52 = vadd.f32 %v2183_v63, %v1608_v0 }
0x1390   : > { %v1613_v4 = vmul.f32 %v1609_v52, %v2455_v41  ;;  %v2094_v41 = vld [vmem:[%s2850_s7 + $0x50] sm:$0xff]  ;;  %v1612_v47 = vmul.f32 0.5, %v1609_v52 }
0x1391   : > { %1727 = vmatpush.bf16.msra.mxu3 %v2094_v41 }
0x1392   : > { %v1614_v5 = vmul.f32 %v1613_v4, %v1613_v4 }
0x1394   : > { %v1615_v59 = vmin.f32 %v1614_v5, 16.0 }
0x1395   : > { %v1610_v6 = vpop.f32.mrf.mxu2  ;;  %1728 = vmatpush.bf16.msra.mxu3 %v2093_v16 }
0x1396   : > { %v1616_v9 = vmul.f32 2.1237322e-06, %v1615_v59  ;;  %v1627_v10 = vmul.f32 3.8918573e-05, %v1615_v59 }
0x1398   : > { %v1617_v11 = vadd.f32 0.00028619796, %v1616_v9  ;;  %v1628_v12 = vadd.f32 0.001143296, %v1627_v10 }
0x1399   : > { %1729 = vmatpush.bf16.msra.mxu3 %v2092_v19 }
0x139a   : > { %v1618_v13 = vmul.f32 %v1617_v11, %v1615_v59  ;;  %v1629_v14 = vmul.f32 %v1628_v12, %v1615_v59 }
0x139c   : > { %v1630_v60 = vadd.f32 0.014752088, %v1629_v14  ;;  %v1619_v15 = vadd.f32 0.0036580483, %v1618_v13  ;;  %v2185_v13 = vld [vmem:[%s2851_s8 + $0x2] ss:$0 sm:$0xff] }
0x139e   : > { %v1631_v17 = vmul.f32 %v1630_v60, %v1615_v59  ;;  %v1620_v1 = vmul.f32 %v1619_v15, %v1615_v59  ;;  %v2186_v15 = vld [vmem:[%s2851_s8 + $0x3] ss:$0 sm:$0xff] }
0x13a0   : > { %v1632_v18 = vadd.f32 0.112945676, %v1631_v17  ;;  %v1621_v22 = vadd.f32 0.05243302, %v1620_v1 }
0x13a2   : > { %v1633_v20 = vmul.f32 %v1632_v18, %v1615_v59  ;;  %v1622_v26 = vmul.f32 %v1621_v22, %v1615_v59 }
0x13a4   : > { %v1634_v21 = vadd.f32 0.4994258, %v1633_v20  ;;  %v1623_v27 = vadd.f32 0.18741608, %v1622_v26 }
0x13a6   : > { %v1635_v23 = vmul.f32 %v1634_v21, %v1615_v59  ;;  %v1624_v31 = vmul.f32 %v1623_v27, %v1615_v59 }
0x13a8   : > { %v1636_v24 = vadd.f32 1.0, %v1635_v23  ;;  %v1625_v34 = vadd.f32 1.1283791, %v1624_v31 }
0x13aa   : > { %2239 = vrcp.f32 %v1636_v24  ;;  %v1648_v28 = vand.u32 2147483648, %v1636_v24  ;;  %v1646_v36 = vand.u32 2147483647, %v1636_v24  ;;  %vm1642_vm1 = vweird.f32 %v1636_v24 }
0x13ab   : > { %v1626_v39 = vmul.f32 %v1625_v34, %v1613_v4  ;;  %2241 = vrcp.f32 %v2326_v58 }
0x13ac   : > { %v1649_v38 = vor.u32 1.1754944e-38, %v1648_v28  ;;  %vm1647_vm4 = vcmp.eq.f32.partialorder %v1646_v36, 8.507059e+37 }
0x13b0   : > { %v2240_v29 = vpop.eup %2239 }
0x13b1   : > { %v1638_v32 = vmul.f32 %v2240_v29, %v1636_v24  ;;  %vm1643_vm7 = vweird.f32 %v2240_v29  ;;  %v2242_v61 = vpop.eup %2241 }
0x13b2   : > { %vm1644_vm8 = vmor %vm1642_vm1, %vm1643_vm7  ;;  %v1750_v42 = vmul.f32 64.0, %v2242_v61  ;;  %vm1754_vm9 = vweird.f32 %v2242_v61 }
0x13b3   : > { %v1639_v33 = vsub.f32 1.0, %v1638_v32 }
0x13b4   : > { %v1751_v62 = vsub.f32 1.0, %v1750_v42 }
0x13b5   : > { %v1640_v35 = vmul.f32 %v2240_v29, %v1639_v33 }
0x13b6   : > { %v1752_v63 = vmul.f32 %v2242_v61, %v1751_v62 }
0x13b7   : > { %v1641_v37 = vadd.f32 %v2240_v29, %v1640_v35 }
0x13b8   : > { %v1753_v0 = vadd.f32 %v2242_v61, %v1752_v63 }
0x13b9   : > { %v1645_v40 = vsel %vm1644_vm8, %v2240_v29, %v1641_v37 }
0x13ba   : > { %v1650_v44 = vsel %vm1647_vm4, %v1649_v38, %v1645_v40 }
0x13bb   : > { %v1651_v45 = vmul.f32 %v1650_v44, %v1626_v39 }
0x13bd   : > { %v2011_v46 = vclamps-f32 %v1651_v45, 1.0 }
0x13bf   : > { %v1654_v48 = vadd.f32 1.0, %v2011_v46 }
0x13c1   : > { %v1655_v50 = vmul.f32 %v1654_v48, %v1612_v47 }
0x13c3   : > { %v1656_v51 = vpack.c.bf16 %v1655_v50, %v1655_v50 }
0x13c5   : > { %1730 = vmatmul.bf16.vlgmr.msra.gmra.mxu3 %v1656_v51 }
0x1448   : > { %v1731_v53 = vpop.f32.mrf.mxu3 }
0x1449   : > { %v1735_v54 = vadd.f32 %v1731_v53, %v2746_v7  ;;  %v1755_v7 = vsel %vm1754_vm9, %v2242_v61, %v1753_v0 }
0x144b   : > { %v1738_v30 = vadd.f32 %v2184_v43, %v1735_v54 }
0x144d   : > { %1740 = vrot.lane.b32.xlu2 %v1738_v30, %s2876_s24  ;;  %s1796_s24 = sshll.u32 %s1792_s26, 4  ;;  %s1797_s24 = int_to_ptr.hbm [resolvable:$true] %s1796_s24 }
0x144e   : > { %s2259_s25 = sshra.s32 %s1797_s24, 4  ;;  %s2260_s25 = int_to_ptr.hbm [resolvable:$true] %s2259_s25 }
0x144f   : > { %s2261_s23 = scalar_lea.hbm %s2260_s25, 8  ;;  %p2266_p0 = scmp.lt.s32.totalorder %s2260_s25, %s2852_s9 }
0x1450   : > { %v1733_v55 = vpop.f32.mrf.mxu3  ;;  %p2262_p11 = scmp.ne.s32.totalorder %s2260_s25, %s2261_s23  ;;  %p2267_p1 = scmp.lt.s32.totalorder %s2265_s22, %s2261_s23 }
0x1452   : > { %p2263_p12 = pnand %p2262_p11, %p2415_p5  ;;  %p2268_p2 = por %p2267_p1, %p2266_p0 }
0x1454   : > { %p2264_p13 = pneg %p2263_p12 }
0x1456   : > { %p2269_p3 = pnand %p2268_p2, %p2264_p13 }
0x14a7   : > { %v1741_v56 = vpop.permute.xlu2 %1740 }
0x14a8   : > { %v1743_v3 = vsel %vm517_vm14, %v2653_v25, %v1741_v56 }
0x14a9   : > { %v1746_v57 = vsel %vm534_vm2, %v1743_v3, 0.0 }
0x14aa   : > { %1747 = vadd.xlane.f32.xlu2 %v1746_v57 }
0x151d   : > { %v1748_v2 = vpop.xlane.xlu2 %1747 }
0x151e   : > { %v1756_v52 = vmul.f32 %v1755_v7, %v1748_v2 }
0x1520   : > { %v1757_v4 = vsub.f32 %v1743_v3, %v1756_v52 }
0x1522   : > { %v1758_v49 = vmul.f32 %v1757_v4, %v1757_v4 }
0x1524   : > { %v1759_v25 = vsel %vm534_vm2, %v1758_v49, 0.0 }
0x1525   : > { %1760 = vadd.xlane.f32.xlu1 %v1759_v25 }
0x1598   : > { %v1761_v5 = vpop.xlane.xlu1 %1760 }
0x1599   : > { %v1762_v59 = vmul.f32 %v1761_v5, %v1755_v7 }
0x159b   : > { %v1763_v6 = vadd.f32 1e-05, %v1762_v59 }
0x159d   : > { %2243 = vrsqrt.f32 %v1763_v6  ;;  %vm1770_vm10 = vweird.f32 %v1763_v6 }
0x15a3   : > { %v2244_v8 = vpop.eup %2243 }
0x15a4   : > { %v1765_v9 = vmul.f32 %v2244_v8, %v1763_v6  ;;  %vm1771_vm14 = vweird.f32 %v2244_v8 }
0x15a5   : > { %vm1772_vm11 = vmor %vm1770_vm10, %vm1771_vm14 }
0x15a6   : > { %v1766_v10 = vmul.f32 %v2244_v8, %v1765_v9 }
0x15a8   : > { %v1767_v11 = vmul.f32 0.5, %v1766_v10 }
0x15aa   : > { %v1768_v12 = vsub.f32 1.5, %v1767_v11 }
0x15ac   : > { %v1769_v41 = vmul.f32 %v2244_v8, %v1768_v12 }
0x15ae   : > { %v1773_v14 = vsel %vm1772_vm11, %v2244_v8, %v1769_v41 }
0x15af   : > { %v1774_v60 = vmul.f32 %v1773_v14, %v1757_v4 }
0x15b1   : > { %v1776_v16 = vmul.f32 %v2185_v13, %v1774_v60 }
0x15b3   : > { %v1778_v17 = vadd.f32 %v2186_v15, %v1776_v16 }
0x15b5   : > { %v1779_v18 = vsel %vm534_vm2, %v1778_v17, 0.0 }
0x15b6   : > { %1780 = vst [vmem:[%s325_s13] sm:$0xff] %v1779_v18 }
0x15b7   : > { %2272 = shalt.err (!%p2269_p3)
}
0x15b8   : > { %2100 = dma.vmem_to_hbm [thread:$0]  (%p2415_p5), %s1795_s14, 128, %s1797_s24, %s1782_s16  }
0x15b9 PF: > { %p2106_p4 = scmp.ge.s32.totalorder %s2307_s12, 2  ;;  %s1808_s17 = sand.u32 1, %s2295_s30  }
0x15ba   : > { %s1809_s27 = scalar_lea.sflag [#allocation4], %s1808_s17 }
0x15bb   : > { %p2103_p7 = pnand %p2106_p4, %p2419_p6 }
0x15bd   : > { %p2104_p8 = pneg %p2103_p7 }
0x15bf   : > { %2290 = dma.done.wait (%p2104_p8), %s1809_s27, 128  }
0x15c0   : > { %2292 = vsyncadd (%p2104_p8), %s1809_s27, 4294967168  ;;  %p19_p9 = scmp.ge.s32.totalorder %s2402_s15, 4   ;;  %s2877_s30 = smov %s2299_s10 }
0x15c1   : > { %s2878_s10 = smov %s2303_s11  ;;  %s2879_s11 = smov %s2413_s18 }
0x15c2   : > { %s2880_s12 = smov %s2402_s15  ;;  %21 = sbr.rel (!%p19_p9) target bundleno = 3 (0x3), region = 96 }
0x15c7   :  { %1815 = vsyncpa [#allocation4], 1 }
0x15c8   :  { %1817 = vsyncpa [#allocation4 + $0x1], 1 }

</bundles_post_ra>
